<compile_context>
chip_gen: v7x
topology: tpu7x:2x2x1
jax: 0.10.0
libtpu: 0.0.40
codegen_flags: <defaults>
</compile_context>

<pallas_src>
import functools

import jax
import jax.numpy as jnp
from jax import lax
from jax.experimental import pallas as pl
from jax.experimental.pallas import tpu as pltpu

LN_EPS = 1e-5
NEG_BIG = -1e30          # large finite negative for the causal mask (tile-safe)


def _vmem_capacity_bytes():
    """Physical VMEM of the local TPU generation (conservative fallback)."""
    try:
        info = pltpu.get_tpu_info()
        cap = getattr(info, "vmem_capacity_bytes", None)
        if cap:
            return int(cap)
    except Exception:
        pass
    return 64 * 1024 * 1024                    # assume the smallest (v7x-sized) VMEM


_VMEM_CAP = _vmem_capacity_bytes()
# Scoped VMEM budget per generation: ~48 MiB on 64 MiB parts (v7x),
# ~96 MiB on 128 MiB parts (v5e / v6e), capped at 112 MiB.
VMEM_LIMIT_BYTES = min(_VMEM_CAP * 3 // 4, 112 * 1024 * 1024)
_BIG_VMEM = _VMEM_CAP >= 96 * 1024 * 1024

# Tiling knobs (clamped to the actual problem size at call time).
Q_TILE_TARGET = 256                              # query rows per attention grid step
ROW_TILE_TARGET = 512                            # flattened-token rows per FF/head block
FF_CHUNK_TARGET = 4096 if _BIG_VMEM else 2048    # FF hidden (4*D) cols streamed per step
HEAD_TILE_TARGET = 4096 if _BIG_VMEM else 2048   # vocab cols per LM-head grid step


def _pick_tile(n, target, step):
    """Largest step-aligned tile <= target that divides n exactly, else n itself."""
    if n <= target:
        return n
    c = (target // step) * step
    while c >= step:
        if n % c == 0:
            return c
        c -= step
    return n


# ----------------------------- in-kernel helpers ------------------------------
def _layernorm(v, g, b):
    # v: (R, D), g/b: (1, D)   (unbiased=False, eps=1e-5 — matches the book LayerNorm)
    mu = jnp.mean(v, axis=-1, keepdims=True)
    var = jnp.mean((v - mu) ** 2, axis=-1, keepdims=True)
    return (v - mu) * lax.rsqrt(var + LN_EPS) * g + b


def _gelu_tanh(x):
    # GPT-2 / book GELU (tanh approximation)
    return 0.5 * x * (1.0 + jnp.tanh(
        jnp.sqrt(2.0 / jnp.pi) * (x + 0.044715 * x * x * x)))


# --------------------- attention sub-block kernel (pre-LN MHA) ----------------
# Grid = (B, T // q_tile): batch outer ("parallel"), query tiles inner
# ("arbitrary" because the QKV scratch is filled once per batch element).
def attn_block_kernel(x_ref, g_ref, b_ref, wqkv_ref, wo_ref, bo_ref, o_ref,
                      q_sc, k_sc, v_sc, *, num_heads, q_tile):
    qi = pl.program_id(1)
    _, T, D = x_ref.shape
    hd = D // num_heads
    scale = 1.0 / float(hd) ** 0.5

    # QKV projection once per batch element, cast to bf16 immediately, stored in
    # head-major (H, T, hd) scratch so the inner loop is pure batched matmuls.
    @pl.when(qi == 0)
    def _():
        h = _layernorm(x_ref[0], g_ref[...], b_ref[...]).astype(jnp.bfloat16)
        # Three (D, D) column slices of the fused weight bound the f32 temporary
        # to (T, D) while the weight itself still DMAs once as a single block.
        q = jnp.dot(h, wqkv_ref[:, :D], preferred_element_type=jnp.float32)
        q_sc[...] = jnp.transpose(
            (q * scale).astype(jnp.bfloat16).reshape(T, num_heads, hd), (1, 0, 2))
        k = jnp.dot(h, wqkv_ref[:, D:2 * D], preferred_element_type=jnp.float32)
        k_sc[...] = jnp.transpose(
            k.astype(jnp.bfloat16).reshape(T, num_heads, hd), (1, 0, 2))
        v = jnp.dot(h, wqkv_ref[:, 2 * D:], preferred_element_type=jnp.float32)
        v_sc[...] = jnp.transpose(
            v.astype(jnp.bfloat16).reshape(T, num_heads, hd), (1, 0, 2))

    qs = pl.multiple_of(qi * q_tile, q_tile)
    q = q_sc[:, pl.ds(qs, q_tile), :]              # (H, q_tile, hd) bf16, pre-scaled

    m0 = jnp.full((num_heads, q_tile, 1), NEG_BIG, jnp.float32)
    l0 = jnp.zeros((num_heads, q_tile, 1), jnp.float32)
    a0 = jnp.zeros((num_heads, q_tile, hd), jnp.float32)

    def body(j, carry):
        m, l, acc = carry
        ks = pl.multiple_of(j * q_tile, q_tile)
        k = k_sc[:, pl.ds(ks, q_tile), :]          # (H, q_tile, hd) bf16
        v = v_sc[:, pl.ds(ks, q_tile), :]
        s = jnp.einsum("hqd,hkd->hqk", q, k,
                       preferred_element_type=jnp.float32)       # (H, q_tile, q_tile)
        row = lax.broadcasted_iota(jnp.int32, (q_tile, q_tile), 0) + qs
        col = lax.broadcasted_iota(jnp.int32, (q_tile, q_tile), 1) + ks
        s = jnp.where((col > row)[None], NEG_BIG, s)             # causal (finite neg)
        m_new = jnp.maximum(m, jnp.max(s, axis=-1, keepdims=True))
        alpha = jnp.exp(m - m_new)
        p = jnp.exp(s - m_new)
        l_new = alpha * l + jnp.sum(p, axis=-1, keepdims=True)
        acc_new = alpha * acc + jnp.einsum(
            "hqk,hkd->hqd", p.astype(jnp.bfloat16), v,
            preferred_element_type=jnp.float32)
        return m_new, l_new, acc_new

    # Causal skip: kv tiles strictly above the diagonal are never visited.
    _, l, acc = lax.fori_loop(0, qi + 1, body, (m0, l0, a0))

    inv = pl.reciprocal(l, approx=True)                          # EUP slot
    ctx = jnp.transpose(acc * inv, (1, 0, 2)).reshape(q_tile, D).astype(jnp.bfloat16)
    attn = jnp.dot(ctx, wo_ref[...], preferred_element_type=jnp.float32)
    # residual + output bias, added once per q tile (dropout in eval = identity)
    o_ref[0] = x_ref[0, pl.ds(qs, q_tile), :] + bo_ref[...] + attn


def attention_block(x, lp, *, num_heads):
    B, T, D = x.shape
    hd = D // num_heads
    q_tile = _pick_tile(T, Q_TILE_TARGET, 8)
    n_q = T // q_tile
    # TODO(synk): for very large D (e.g. GPT-2 XL) stream Wqkv over a column grid
    # axis like the FF kernel instead of holding the full (D, 3D) block resident.
    kernel = functools.partial(attn_block_kernel, num_heads=num_heads, q_tile=q_tile)
    return pl.pallas_call(
        kernel,
        out_shape=jax.ShapeDtypeStruct((B, T, D), jnp.float32),
        grid_spec=pltpu.PrefetchScalarGridSpec(
            num_scalar_prefetch=0,
            grid=(B, n_q),
            in_specs=[
                pl.BlockSpec((1, T, D), lambda b, q: (b, 0, 0)),   # x (resident over q)
                pl.BlockSpec((1, D), lambda b, q: (0, 0)),         # ln1 gamma
                pl.BlockSpec((1, D), lambda b, q: (0, 0)),         # ln1 beta
                pl.BlockSpec((D, 3 * D), lambda b, q: (0, 0)),     # fused Wqkv (bf16)
                pl.BlockSpec((D, D), lambda b, q: (0, 0)),         # Wo (bf16)
                pl.BlockSpec((1, D), lambda b, q: (0, 0)),         # bo
            ],
            out_specs=pl.BlockSpec((1, q_tile, D), lambda b, q: (b, q, 0)),
            scratch_shapes=[pltpu.VMEM((num_heads, T, hd), jnp.bfloat16),   # q (scaled)
                            pltpu.VMEM((num_heads, T, hd), jnp.bfloat16),   # k
                            pltpu.VMEM((num_heads, T, hd), jnp.bfloat16)],  # v
        ),
        compiler_params=pltpu.CompilerParams(
            dimension_semantics=("parallel", "arbitrary"),
            vmem_limit_bytes=VMEM_LIMIT_BYTES),
    )(x, lp["ln1_g"], lp["ln1_b"], lp["wqkv"], lp["wo"], lp["bo"])


# ------------------- feed-forward sub-block kernel (pre-LN FF) ----------------
# Operates on the flattened (B*T, D) token axis so each W1/W2 chunk streams from
# HBM once per layer. Grid = (row tiles, hidden chunks); LN(x) is computed once
# per row tile into bf16 scratch, the f32 accumulator lives in scratch, and the
# output gets one lane-dense store on the last chunk.
def ff_block_kernel(x_ref, g_ref, b_ref, w1_ref, b1_ref, w2_ref, b2_ref, o_ref,
                    h_sc, acc_sc):
    c = pl.program_id(1)

    @pl.when(c == 0)
    def _():
        x = x_ref[...]                                     # (rt, D) f32
        h_sc[...] = _layernorm(x, g_ref[...], b_ref[...]).astype(jnp.bfloat16)
        acc_sc[...] = x + b2_ref[...]                      # residual + out-bias, once

    f = jnp.dot(h_sc[...], w1_ref[...],
                preferred_element_type=jnp.float32) + b1_ref[...]
    f = _gelu_tanh(f).astype(jnp.bfloat16)                 # (rt, ch) only — never (rt, 4D)
    acc_sc[...] = acc_sc[...] + jnp.dot(f, w2_ref[...],
                                        preferred_element_type=jnp.float32)

    @pl.when(c == pl.num_programs(1) - 1)
    def _():
        o_ref[...] = acc_sc[...]                           # single lane-dense store


def ff_block(x2d, lp):
    N, D = x2d.shape
    H4 = lp["w1"].shape[1]
    ch = _pick_tile(H4, FF_CHUNK_TARGET, 128)
    rt = _pick_tile(N, ROW_TILE_TARGET, 8)
    assert H4 % ch == 0 and N % rt == 0
    # Guard: the full-width fallback must not silently blow the VMEM budget
    # (double-buffered bf16 W1 + W2 chunks).
    assert 8 * D * ch <= VMEM_LIMIT_BYTES, "FF chunk tile too large for VMEM budget"
    return pl.pallas_call(
        ff_block_kernel,
        out_shape=jax.ShapeDtypeStruct((N, D), jnp.float32),
        grid_spec=pltpu.PrefetchScalarGridSpec(
            num_scalar_prefetch=0,
            grid=(N // rt, H4 // ch),                      # reduction (chunk) axis last
            in_specs=[
                pl.BlockSpec((rt, D), lambda r, c: (r, 0)),      # x (resident over c)
                pl.BlockSpec((1, D), lambda r, c: (0, 0)),       # ln2 gamma
                pl.BlockSpec((1, D), lambda r, c: (0, 0)),       # ln2 beta
                pl.BlockSpec((D, ch), lambda r, c: (0, c)),      # W1 chunk (bf16)
                pl.BlockSpec((1, ch), lambda r, c: (0, c)),      # b1 chunk
                pl.BlockSpec((ch, D), lambda r, c: (c, 0)),      # W2 chunk (bf16)
                pl.BlockSpec((1, D), lambda r, c: (0, 0)),       # b2
            ],
            out_specs=pl.BlockSpec((rt, D), lambda r, c: (r, 0)),
            scratch_shapes=[pltpu.VMEM((rt, D), jnp.bfloat16),   # LN(x) cached per row tile
                            pltpu.VMEM((rt, D), jnp.float32)],   # f32 accumulator
        ),
        compiler_params=pltpu.CompilerParams(
            dimension_semantics=("parallel", "arbitrary"),
            vmem_limit_bytes=VMEM_LIMIT_BYTES),
    )(x2d, lp["ln2_g"], lp["ln2_b"], lp["w1"], lp["b1"], lp["w2"], lp["b2"])


# ---------------------- final LayerNorm + vocab head kernel -------------------
# Flattened (B*T, D) rows; vocab tiled with a lane-dense tv that always divides
# the (128-padded) vocab; LN(x) computed once per row tile into bf16 scratch.
def final_head_kernel(x_ref, g_ref, b_ref, wh_ref, o_ref, h_sc):
    @pl.when(pl.program_id(1) == 0)
    def _():
        h_sc[...] = _layernorm(x_ref[...], g_ref[...], b_ref[...]).astype(jnp.bfloat16)
    o_ref[...] = jnp.dot(h_sc[...], wh_ref[...], preferred_element_type=jnp.float32)


def final_head(x2d, g, b, w_head):
    N, D = x2d.shape
    V = w_head.shape[1]
    tv = min(HEAD_TILE_TARGET, ((V + 127) // 128) * 128)
    Vp = pl.cdiv(V, tv) * tv
    if Vp != V:
        # TODO(synk): pad the head weight once at init instead of per forward call.
        w_head = jnp.pad(w_head, ((0, 0), (0, Vp - V)))
    rt = _pick_tile(N, ROW_TILE_TARGET, 8)
    assert N % rt == 0 and Vp % tv == 0
    out = pl.pallas_call(
        final_head_kernel,
        out_shape=jax.ShapeDtypeStruct((N, Vp), jnp.float32),
        grid_spec=pltpu.PrefetchScalarGridSpec(
            num_scalar_prefetch=0,
            grid=(N // rt, Vp // tv),
            in_specs=[
                pl.BlockSpec((rt, D), lambda r, j: (r, 0)),      # x (resident over j)
                pl.BlockSpec((1, D), lambda r, j: (0, 0)),       # ln_f gamma
                pl.BlockSpec((1, D), lambda r, j: (0, 0)),       # ln_f beta
                pl.BlockSpec((D, tv), lambda r, j: (0, j)),      # head tile (bf16)
            ],
            out_specs=pl.BlockSpec((rt, tv), lambda r, j: (r, j)),
            scratch_shapes=[pltpu.VMEM((rt, D), jnp.bfloat16)],  # LN(x) cached per row tile
        ),
        compiler_params=pltpu.CompilerParams(
            dimension_semantics=("parallel", "arbitrary"),
            vmem_limit_bytes=VMEM_LIMIT_BYTES),
    )(x2d, g, b, w_head)
    return out[:, :V]


# ------------------------------- full forward ---------------------------------
def gpt2_forward(tokens, params, *, num_heads):
    # TODO(synk): embedding gathers stay as plain-JAX indexing (no Pallas gather here).
    tok_emb = params["tok_emb"][tokens]                     # (B, T, D)
    pos_emb = params["pos_emb"][: tokens.shape[1]]          # (T, D)
    x = tok_emb + pos_emb[None]                             # dropout (eval) = identity
    B, T, D = x.shape
    for lp in params["blocks"]:
        # TODO(synk): attention + FF could be fused into one pallas_call to halve the
        # per-layer HBM round-trips of the f32 residual stream.
        x = attention_block(x, lp, num_heads=num_heads)     # pre-LN MHA + residual
        x = ff_block(x.reshape(B * T, D), lp).reshape(B, T, D)   # pre-LN FF + residual
    logits = final_head(x.reshape(B * T, D),
                        params["ln_f_g"], params["ln_f_b"], params["w_head"])
    return logits.reshape(B, T, -1)


# Pure-JAX f32 reference (same math, same bf16-rounded weight values) for validation.
def gpt2_forward_ref(tokens, params, *, num_heads):
    f32 = lambda a: a.astype(jnp.float32)

    def ln(v, g, b):
        mu = jnp.mean(v, -1, keepdims=True)
        var = jnp.mean((v - mu) ** 2, -1, keepdims=True)
        return (v - mu) / jnp.sqrt(var + LN_EPS) * g + b

    x = params["tok_emb"][tokens] + params["pos_emb"][: tokens.shape[1]][None]
    B, T, D = x.shape
    hd = D // num_heads
    mask = jnp.triu(jnp.ones((T, T), bool), k=1)
    for lp in params["blocks"]:
        h = ln(x, lp["ln1_g"], lp["ln1_b"])
        qkv = h @ f32(lp["wqkv"])
        q, k, v = jnp.split(qkv, 3, axis=-1)
        q = q.reshape(B, T, num_heads, hd).transpose(0, 2, 1, 3)
        k = k.reshape(B, T, num_heads, hd).transpose(0, 2, 1, 3)
        v = v.reshape(B, T, num_heads, hd).transpose(0, 2, 1, 3)
        s = jnp.einsum("bhqd,bhkd->bhqk", q, k)
        s = jnp.where(mask, -jnp.inf, s) / jnp.sqrt(jnp.float32(hd))
        p = jax.nn.softmax(s, axis=-1)
        ctx = jnp.einsum("bhqk,bhkd->bhqd", p, v).transpose(0, 2, 1, 3).reshape(B, T, D)
        x = x + ctx @ f32(lp["wo"]) + lp["bo"]
        h2 = ln(x, lp["ln2_g"], lp["ln2_b"])
        f = h2 @ f32(lp["w1"]) + lp["b1"]
        f = 0.5 * f * (1.0 + jnp.tanh(jnp.sqrt(2.0 / jnp.pi) * (f + 0.044715 * f ** 3)))
        x = x + f @ f32(lp["w2"]) + lp["b2"]
    return ln(x, params["ln_f_g"], params["ln_f_b"]) @ f32(params["w_head"])


# ------------------------------ parameter setup --------------------------------
def init_params(key, vocab, emb, ctx, num_layers):
    H4 = 4 * emb
    ks = iter(jax.random.split(key, 3 + num_layers * 4))

    def nrm(k, shape, dtype):
        return (0.02 * jax.random.normal(k, shape, dtype=jnp.float32)).astype(dtype)

    params = {
        "tok_emb": nrm(next(ks), (vocab, emb), jnp.float32),
        "pos_emb": nrm(next(ks), (ctx, emb), jnp.float32),
        "ln_f_g": jnp.ones((1, emb), jnp.float32),
        "ln_f_b": jnp.zeros((1, emb), jnp.float32),
        "w_head": nrm(next(ks), (emb, vocab), jnp.bfloat16),     # bf16 in HBM
        "blocks": [],
    }
    for _ in range(num_layers):
        params["blocks"].append({
            "ln1_g": jnp.ones((1, emb), jnp.float32),
            "ln1_b": jnp.zeros((1, emb), jnp.float32),
            "wqkv": nrm(next(ks), (emb, 3 * emb), jnp.bfloat16),  # fused, qkv_bias=False
            "wo": nrm(next(ks), (emb, emb), jnp.bfloat16),
            "bo": jnp.zeros((1, emb), jnp.float32),
            "ln2_g": jnp.ones((1, emb), jnp.float32),
            "ln2_b": jnp.zeros((1, emb), jnp.float32),
            "w1": nrm(next(ks), (emb, H4), jnp.bfloat16),
            "b1": jnp.zeros((1, H4), jnp.float32),
            "w2": nrm(next(ks), (H4, emb), jnp.bfloat16),
            "b2": jnp.zeros((1, emb), jnp.float32),
        })
    return params


if __name__ == "__main__":
    VOCAB, EMB, CTX, HEADS, LAYERS = 128, 32, 16, 4, 2
    B, T = 2, 8

    key = jax.random.PRNGKey(0)
    k_par, k_tok = jax.random.split(key)
    params = init_params(k_par, VOCAB, EMB, CTX, LAYERS)
    tokens = jax.random.randint(k_tok, (B, T), 0, VOCAB, dtype=jnp.int32)

    fwd = jax.jit(functools.partial(gpt2_forward, num_heads=HEADS))
    logits = jax.block_until_ready(fwd(tokens, params))

    assert logits.shape == (B, T, VOCAB)
    assert bool(jnp.all(jnp.isfinite(logits)))

    ref = gpt2_forward_ref(tokens, params, num_heads=HEADS)
    assert bool(jnp.allclose(logits, ref, rtol=3e-2, atol=3e-2)), "mismatch vs JAX reference"

    print("KERNEL_OK")
</pallas_src>

<mosaic_0001>
module attributes {stable_mosaic.version = 11 : i64} {
  func.func @attn_block_kernel(%arg0: i32, %arg1: i32, %arg2: memref<1x8x32xf32, #tpu.memory_space<vmem>>, %arg3: memref<1x32xf32, #tpu.memory_space<vmem>>, %arg4: memref<1x32xf32, #tpu.memory_space<vmem>>, %arg5: memref<32x96xbf16, #tpu.memory_space<vmem>>, %arg6: memref<32x32xbf16, #tpu.memory_space<vmem>>, %arg7: memref<1x32xf32, #tpu.memory_space<vmem>>, %arg8: memref<1x8x32xf32, #tpu.memory_space<vmem>>, %arg9: memref<4x8x8xbf16, #tpu.memory_space<vmem>>, %arg10: memref<4x8x8xbf16, #tpu.memory_space<vmem>>, %arg11: memref<4x8x8xbf16, #tpu.memory_space<vmem>>) attributes {dimension_semantics = [#tpu.dimension_semantics<parallel>, #tpu.dimension_semantics<arbitrary>], iteration_bounds = array<i64: 2, 1>, scalar_prefetch = 0 : i64, scratch_operands = 3 : i64, tpu.core_type = #tpu.core_type<tc>, window_params = [{transform_indices = @transform_0, window_bounds = array<i64: 1, 8, 32>}, {pipeline_mode = #tpu.pipeline_mode<synchronous>, transform_indices = @transform_1, window_bounds = array<i64: 1, 32>}, {pipeline_mode = #tpu.pipeline_mode<synchronous>, transform_indices = @transform_2, window_bounds = array<i64: 1, 32>}, {pipeline_mode = #tpu.pipeline_mode<synchronous>, transform_indices = @transform_3, window_bounds = array<i64: 32, 96>}, {pipeline_mode = #tpu.pipeline_mode<synchronous>, transform_indices = @transform_4, window_bounds = array<i64: 32, 32>}, {pipeline_mode = #tpu.pipeline_mode<synchronous>, transform_indices = @transform_5, window_bounds = array<i64: 1, 32>}, {transform_indices = @transform_6, window_bounds = array<i64: 1, 8, 32>}]} {
    %c0_i32 = arith.constant 0 : i32
    %0 = arith.cmpi eq, %arg1, %c0_i32 : i32
    %1 = arith.extui %0 : i1 to i32
    %c0_i32_0 = arith.constant 0 : i32
    %2 = arith.cmpi ne, %1, %c0_i32_0 : i32
    scf.if %2 {
      %c0_16 = arith.constant 0 : index
      %c0_17 = arith.constant 0 : index
      %c0_18 = arith.constant 0 : index
      %32 = vector.load %arg2[%c0_16, %c0_17, %c0_18] : memref<1x8x32xf32, #tpu.memory_space<vmem>>, vector<1x8x32xf32>
      %33 = vector.shape_cast %32 : vector<1x8x32xf32> to vector<8x32xf32>
      %c0_19 = arith.constant 0 : index
      %c0_20 = arith.constant 0 : index
      %34 = vector.load %arg3[%c0_19, %c0_20] : memref<1x32xf32, #tpu.memory_space<vmem>>, vector<1x32xf32>
      %c0_21 = arith.constant 0 : index
      %c0_22 = arith.constant 0 : index
      %35 = vector.load %arg4[%c0_21, %c0_22] : memref<1x32xf32, #tpu.memory_space<vmem>>, vector<1x32xf32>
      %cst_23 = arith.constant dense<0.000000e+00> : vector<8xf32>
      %36 = vector.multi_reduction <add>, %33, %cst_23 [1] : vector<8x32xf32> to vector<8xf32>
      %37 = vector.shape_cast %36 : vector<8xf32> to vector<8x1xf32>
      %cst_24 = arith.constant 3.200000e+01 : f32
      %38 = vector.broadcast %cst_24 : f32 to vector<8x1xf32>
      %39 = arith.divf %37, %38 : vector<8x1xf32>
      %40 = vector.broadcast %39 : vector<8x1xf32> to vector<8x32xf32>
      %41 = arith.subf %33, %40 : vector<8x32xf32>
      %42 = arith.mulf %41, %41 : vector<8x32xf32>
      %cst_25 = arith.constant dense<0.000000e+00> : vector<8xf32>
      %43 = vector.multi_reduction <add>, %42, %cst_25 [1] : vector<8x32xf32> to vector<8xf32>
      %44 = vector.shape_cast %43 : vector<8xf32> to vector<8x1xf32>
      %cst_26 = arith.constant 3.200000e+01 : f32
      %45 = vector.broadcast %cst_26 : f32 to vector<8x1xf32>
      %46 = arith.divf %44, %45 : vector<8x1xf32>
      %47 = vector.broadcast %39 : vector<8x1xf32> to vector<8x32xf32>
      %48 = arith.subf %33, %47 : vector<8x32xf32>
      %cst_27 = arith.constant 9.99999974E-6 : f32
      %49 = vector.broadcast %cst_27 : f32 to vector<8x1xf32>
      %50 = arith.addf %46, %49 : vector<8x1xf32>
      %51 = math.rsqrt %50 : vector<8x1xf32>
      %52 = vector.broadcast %51 : vector<8x1xf32> to vector<8x32xf32>
      %53 = arith.mulf %48, %52 : vector<8x32xf32>
      %54 = vector.broadcast %34 : vector<1x32xf32> to vector<8x32xf32>
      %55 = arith.mulf %53, %54 : vector<8x32xf32>
      %56 = vector.broadcast %35 : vector<1x32xf32> to vector<8x32xf32>
      %57 = arith.addf %55, %56 : vector<8x32xf32>
      %58 = arith.truncf %57 : vector<8x32xf32> to vector<8x32xbf16>
      %c0_28 = arith.constant 0 : index
      %c0_29 = arith.constant 0 : index
      %59 = vector.load %arg5[%c0_28, %c0_29] : memref<32x96xbf16, #tpu.memory_space<vmem>>, vector<32x32xbf16>
      %cst_30 = arith.constant dense<0.000000e+00> : vector<8x32xf32>
      %60 = tpu.matmul %58, %59, %cst_30 {dimension_numbers = #tpu.dot_dimension_numbers<[1], [0], [0], [1], [0, 0, 1, 1], [], []>} : vector<8x32xbf16>, vector<32x32xbf16>, vector<8x32xf32> -> vector<8x32xf32>
      %cst_31 = arith.constant 0.353553385 : f32
      %61 = vector.broadcast %cst_31 : f32 to vector<8x32xf32>
      %62 = arith.mulf %60, %61 : vector<8x32xf32>
      %63 = arith.truncf %62 : vector<8x32xf32> to vector<8x32xbf16>
      %64 = vector.shape_cast %63 : vector<8x32xbf16> to vector<8x4x8xbf16>
      %65 = tpu.transpose %64, [1, 0, 2] : vector<8x4x8xbf16> -> vector<4x8x8xbf16>
      %c0_32 = arith.constant 0 : index
      %c0_33 = arith.constant 0 : index
      %c0_34 = arith.constant 0 : index
      %66 = vector.load %arg9[%c0_32, %c0_33, %c0_34] : memref<4x8x8xbf16, #tpu.memory_space<vmem>>, vector<4x8x8xbf16>
      tpu.vector_store %arg9[%c0_32, %c0_33, %c0_34], %65 {strides = array<i32>} : memref<4x8x8xbf16, #tpu.memory_space<vmem>>, vector<4x8x8xbf16>,
      %c0_35 = arith.constant 0 : index
      %c32 = arith.constant 32 : index
      %67 = vector.load %arg5[%c0_35, %c32] : memref<32x96xbf16, #tpu.memory_space<vmem>>, vector<32x32xbf16>
      %cst_36 = arith.constant dense<0.000000e+00> : vector<8x32xf32>
      %68 = tpu.matmul %58, %67, %cst_36 {dimension_numbers = #tpu.dot_dimension_numbers<[1], [0], [0], [1], [0, 0, 1, 1], [], []>} : vector<8x32xbf16>, vector<32x32xbf16>, vector<8x32xf32> -> vector<8x32xf32>
      %69 = arith.truncf %68 : vector<8x32xf32> to vector<8x32xbf16>
      %70 = vector.shape_cast %69 : vector<8x32xbf16> to vector<8x4x8xbf16>
      %71 = tpu.transpose %70, [1, 0, 2] : vector<8x4x8xbf16> -> vector<4x8x8xbf16>
      %c0_37 = arith.constant 0 : index
      %c0_38 = arith.constant 0 : index
      %c0_39 = arith.constant 0 : index
      %72 = vector.load %arg10[%c0_37, %c0_38, %c0_39] : memref<4x8x8xbf16, #tpu.memory_space<vmem>>, vector<4x8x8xbf16>
      tpu.vector_store %arg10[%c0_37, %c0_38, %c0_39], %71 {strides = array<i32>} : memref<4x8x8xbf16, #tpu.memory_space<vmem>>, vector<4x8x8xbf16>,
      %c0_40 = arith.constant 0 : index
      %c64 = arith.constant 64 : index
      %73 = vector.load %arg5[%c0_40, %c64] : memref<32x96xbf16, #tpu.memory_space<vmem>>, vector<32x32xbf16>
      %cst_41 = arith.constant dense<0.000000e+00> : vector<8x32xf32>
      %74 = tpu.matmul %58, %73, %cst_41 {dimension_numbers = #tpu.dot_dimension_numbers<[1], [0], [0], [1], [0, 0, 1, 1], [], []>} : vector<8x32xbf16>, vector<32x32xbf16>, vector<8x32xf32> -> vector<8x32xf32>
      %75 = arith.truncf %74 : vector<8x32xf32> to vector<8x32xbf16>
      %76 = vector.shape_cast %75 : vector<8x32xbf16> to vector<8x4x8xbf16>
      %77 = tpu.transpose %76, [1, 0, 2] : vector<8x4x8xbf16> -> vector<4x8x8xbf16>
      %c0_42 = arith.constant 0 : index
      %c0_43 = arith.constant 0 : index
      %c0_44 = arith.constant 0 : index
      %78 = vector.load %arg11[%c0_42, %c0_43, %c0_44] : memref<4x8x8xbf16, #tpu.memory_space<vmem>>, vector<4x8x8xbf16>
      tpu.vector_store %arg11[%c0_42, %c0_43, %c0_44], %77 {strides = array<i32>} : memref<4x8x8xbf16, #tpu.memory_space<vmem>>, vector<4x8x8xbf16>,
    } else {
    }
    %c8_i32 = arith.constant 8 : i32
    %3 = arith.muli %arg1, %c8_i32 : i32
    %4 = tpu.assume_multiple %3, 8 : i32
    %c0 = arith.constant 0 : index
    %5 = arith.index_cast %4 : i32 to index
    %c0_1 = arith.constant 0 : index
    %6 = vector.load %arg9[%c0, %5, %c0_1] : memref<4x8x8xbf16, #tpu.memory_space<vmem>>, vector<4x8x8xbf16>
    %cst = arith.constant -1.000000e+30 : f32
    %7 = vector.broadcast %cst : f32 to vector<4x8x1xf32>
    %cst_2 = arith.constant 0.000000e+00 : f32
    %8 = vector.broadcast %cst_2 : f32 to vector<4x8x1xf32>
    %cst_3 = arith.constant 0.000000e+00 : f32
    %9 = vector.broadcast %cst_3 : f32 to vector<4x8x8xf32>
    %c1_i32 = arith.constant 1 : i32
    %10 = arith.addi %arg1, %c1_i32 : i32
    %c0_i32_4 = arith.constant 0 : i32
    %11 = arith.subi %10, %c0_i32_4 : i32
    %12 = arith.addi %c0_i32_4, %11 : i32
    %c1_i32_5 = arith.constant 1 : i32
    %13:3 = scf.for %arg12 = %c0_i32_4 to %12 step %c1_i32_5 iter_args(%arg13 = %7, %arg14 = %8, %arg15 = %9) -> (vector<4x8x1xf32>, vector<4x8x1xf32>, vector<4x8x8xf32>)  : i32 {
      %c8_i32_16 = arith.constant 8 : i32
      %32 = arith.muli %arg12, %c8_i32_16 : i32
      %33 = tpu.assume_multiple %32, 8 : i32
      %c0_17 = arith.constant 0 : index
      %34 = arith.index_cast %33 : i32 to index
      %c0_18 = arith.constant 0 : index
      %35 = vector.load %arg10[%c0_17, %34, %c0_18] : memref<4x8x8xbf16, #tpu.memory_space<vmem>>, vector<4x8x8xbf16>
      %c0_19 = arith.constant 0 : index
      %36 = arith.index_cast %33 : i32 to index
      %c0_20 = arith.constant 0 : index
      %37 = vector.load %arg11[%c0_19, %36, %c0_20] : memref<4x8x8xbf16, #tpu.memory_space<vmem>>, vector<4x8x8xbf16>
      "tpu.trace_start"() <{level = 10 : i32, message = "hqd,hkd->hqk"}> : () -> ()
      %cst_21 = arith.constant dense<0.000000e+00> : vector<4x8x8xf32>
      %38 = tpu.matmul %6, %35, %cst_21 {dimension_numbers = #tpu.dot_dimension_numbers<[2], [2], [1], [1], [0, 0, 0, 1, 1, 1], [0], [0]>} : vector<4x8x8xbf16>, vector<4x8x8xbf16>, vector<4x8x8xf32> -> vector<4x8x8xf32>
      "tpu.trace_stop"() : () -> ()
      %39 = tpu.iota {dimensions = array<i32: 0>} : vector<8x8xi32>
      %40 = vector.broadcast %4 : i32 to vector<8x8xi32>
      %41 = arith.addi %39, %40 : vector<8x8xi32>
      %42 = tpu.iota {dimensions = array<i32: 1>} : vector<8x8xi32>
      %43 = vector.broadcast %33 : i32 to vector<8x8xi32>
      %44 = arith.addi %42, %43 : vector<8x8xi32>
      %45 = arith.cmpi sgt, %44, %41 : vector<8x8xi32>
      %46 = vector.shape_cast %45 : vector<8x8xi1> to vector<1x8x8xi1>
      %cst_22 = arith.constant -1.000000e+30 : f32
      %47 = vector.shape_cast %46 : vector<1x8x8xi1> to vector<1x8x8xi1>
      %48 = vector.broadcast %47 : vector<1x8x8xi1> to vector<4x8x8xi1>
      %49 = vector.broadcast %cst_22 : f32 to vector<4x8x8xf32>
      %50 = arith.select %48, %49, %38 : vector<4x8x8xi1>, vector<4x8x8xf32>
      %cst_23 = arith.constant dense<0xFF800000> : vector<4x8xf32>
      %51 = vector.multi_reduction <maximumf>, %50, %cst_23 [2] : vector<4x8x8xf32> to vector<4x8xf32>
      %52 = vector.shape_cast %51 : vector<4x8xf32> to vector<4x8x1xf32>
      %53 = arith.maximumf %arg13, %52 : vector<4x8x1xf32>
      %54 = arith.subf %arg13, %53 : vector<4x8x1xf32>
      %55 = math.exp %54 : vector<4x8x1xf32>
      %56 = vector.broadcast %53 : vector<4x8x1xf32> to vector<4x8x8xf32>
      %57 = arith.subf %50, %56 : vector<4x8x8xf32>
      %58 = math.exp %57 : vector<4x8x8xf32>
      %59 = arith.mulf %55, %arg14 : vector<4x8x1xf32>
      %cst_24 = arith.constant dense<0.000000e+00> : vector<4x8xf32>
      %60 = vector.multi_reduction <add>, %58, %cst_24 [2] : vector<4x8x8xf32> to vector<4x8xf32>
      %61 = vector.shape_cast %60 : vector<4x8xf32> to vector<4x8x1xf32>
      %62 = arith.addf %59, %61 : vector<4x8x1xf32>
      %63 = vector.broadcast %55 : vector<4x8x1xf32> to vector<4x8x8xf32>
      %64 = arith.mulf %63, %arg15 : vector<4x8x8xf32>
      %65 = arith.truncf %58 : vector<4x8x8xf32> to vector<4x8x8xbf16>
      "tpu.trace_start"() <{level = 10 : i32, message = "hqk,hkd->hqd"}> : () -> ()
      %cst_25 = arith.constant dense<0.000000e+00> : vector<4x8x8xf32>
      %66 = tpu.matmul %65, %37, %cst_25 {dimension_numbers = #tpu.dot_dimension_numbers<[2], [1], [1], [2], [0, 0, 0, 1, 1, 2], [0], [0]>} : vector<4x8x8xbf16>, vector<4x8x8xbf16>, vector<4x8x8xf32> -> vector<4x8x8xf32>
      "tpu.trace_stop"() : () -> ()
      %67 = arith.addf %64, %66 : vector<4x8x8xf32>
      scf.yield %53, %62, %67 : vector<4x8x1xf32>, vector<4x8x1xf32>, vector<4x8x8xf32>
    }
    %14 = tpu.reciprocal %13#1 {approx = true} : vector<4x8x1xf32> -> vector<4x8x1xf32>
    %15 = vector.broadcast %14 : vector<4x8x1xf32> to vector<4x8x8xf32>
    %16 = arith.mulf %13#2, %15 : vector<4x8x8xf32>
    %17 = tpu.transpose %16, [1, 0, 2] : vector<4x8x8xf32> -> vector<8x4x8xf32>
    %18 = vector.shape_cast %17 : vector<8x4x8xf32> to vector<8x32xf32>
    %19 = arith.truncf %18 : vector<8x32xf32> to vector<8x32xbf16>
    %c0_6 = arith.constant 0 : index
    %c0_7 = arith.constant 0 : index
    %20 = vector.load %arg6[%c0_6, %c0_7] : memref<32x32xbf16, #tpu.memory_space<vmem>>, vector<32x32xbf16>
    %cst_8 = arith.constant dense<0.000000e+00> : vector<8x32xf32>
    %21 = tpu.matmul %19, %20, %cst_8 {dimension_numbers = #tpu.dot_dimension_numbers<[1], [0], [0], [1], [0, 0, 1, 1], [], []>} : vector<8x32xbf16>, vector<32x32xbf16>, vector<8x32xf32> -> vector<8x32xf32>
    %c0_9 = arith.constant 0 : index
    %22 = arith.index_cast %4 : i32 to index
    %c0_10 = arith.constant 0 : index
    %23 = vector.load %arg2[%c0_9, %22, %c0_10] : memref<1x8x32xf32, #tpu.memory_space<vmem>>, vector<1x8x32xf32>
    %24 = vector.shape_cast %23 : vector<1x8x32xf32> to vector<8x32xf32>
    %c0_11 = arith.constant 0 : index
    %c0_12 = arith.constant 0 : index
    %25 = vector.load %arg7[%c0_11, %c0_12] : memref<1x32xf32, #tpu.memory_space<vmem>>, vector<1x32xf32>
    %26 = vector.broadcast %25 : vector<1x32xf32> to vector<8x32xf32>
    %27 = arith.addf %24, %26 : vector<8x32xf32>
    %28 = arith.addf %27, %21 : vector<8x32xf32>
    %c0_13 = arith.constant 0 : index
    %c0_14 = arith.constant 0 : index
    %c0_15 = arith.constant 0 : index
    %29 = vector.load %arg8[%c0_13, %c0_14, %c0_15] : memref<1x8x32xf32, #tpu.memory_space<vmem>>, vector<1x8x32xf32>
    %30 = vector.shape_cast %29 : vector<1x8x32xf32> to vector<8x32xf32>
    %31 = vector.shape_cast %28 : vector<8x32xf32> to vector<1x8x32xf32>
    tpu.vector_store %arg8[%c0_13, %c0_14, %c0_15], %31 {strides = array<i32>} : memref<1x8x32xf32, #tpu.memory_space<vmem>>, vector<1x8x32xf32>,
    return
  }
  func.func @transform_0(%arg0: i32, %arg1: i32) -> (i32, i32, i32) {
    %c0_i32 = arith.constant 0 : i32
    %c0_i32_0 = arith.constant 0 : i32
    %c0_i32_1 = arith.constant 0 : i32
    return %arg0, %c0_i32, %c0_i32_0 : i32, i32, i32
  }
  func.func @transform_1(%arg0: i32, %arg1: i32) -> (i32, i32) {
    %c0_i32 = arith.constant 0 : i32
    %c0_i32_0 = arith.constant 0 : i32
    %c0_i32_1 = arith.constant 0 : i32
    return %c0_i32, %c0_i32_0 : i32, i32
  }
  func.func @transform_2(%arg0: i32, %arg1: i32) -> (i32, i32) {
    %c0_i32 = arith.constant 0 : i32
    %c0_i32_0 = arith.constant 0 : i32
    %c0_i32_1 = arith.constant 0 : i32
    return %c0_i32, %c0_i32_0 : i32, i32
  }
  func.func @transform_3(%arg0: i32, %arg1: i32) -> (i32, i32) {
    %c0_i32 = arith.constant 0 : i32
    %c0_i32_0 = arith.constant 0 : i32
    %c0_i32_1 = arith.constant 0 : i32
    return %c0_i32, %c0_i32_0 : i32, i32
  }
  func.func @transform_4(%arg0: i32, %arg1: i32) -> (i32, i32) {
    %c0_i32 = arith.constant 0 : i32
    %c0_i32_0 = arith.constant 0 : i32
    %c0_i32_1 = arith.constant 0 : i32
    return %c0_i32, %c0_i32_0 : i32, i32
  }
  func.func @transform_5(%arg0: i32, %arg1: i32) -> (i32, i32) {
    %c0_i32 = arith.constant 0 : i32
    %c0_i32_0 = arith.constant 0 : i32
    %c0_i32_1 = arith.constant 0 : i32
    return %c0_i32, %c0_i32_0 : i32, i32
  }
  func.func @transform_6(%arg0: i32, %arg1: i32) -> (i32, i32, i32) {
    %c0_i32 = arith.constant 0 : i32
    %c0_i32_0 = arith.constant 0 : i32
    return %arg0, %arg1, %c0_i32 : i32, i32, i32
  }
}

module attributes {stable_mosaic.version = 11 : i64} {
  func.func @final_head_kernel(%arg0: i32, %arg1: i32, %arg2: memref<16x32xf32, #tpu.memory_space<vmem>>, %arg3: memref<1x32xf32, #tpu.memory_space<vmem>>, %arg4: memref<1x32xf32, #tpu.memory_space<vmem>>, %arg5: memref<32x128xbf16, #tpu.memory_space<vmem>>, %arg6: memref<16x128xf32, #tpu.memory_space<vmem>>, %arg7: memref<16x32xbf16, #tpu.memory_space<vmem>>) attributes {dimension_semantics = [#tpu.dimension_semantics<parallel>, #tpu.dimension_semantics<arbitrary>], iteration_bounds = array<i64: 1, 1>, scalar_prefetch = 0 : i64, scratch_operands = 1 : i64, tpu.core_type = #tpu.core_type<tc>, window_params = [{transform_indices = @transform_0, window_bounds = array<i64: 16, 32>}, {pipeline_mode = #tpu.pipeline_mode<synchronous>, transform_indices = @transform_1, window_bounds = array<i64: 1, 32>}, {pipeline_mode = #tpu.pipeline_mode<synchronous>, transform_indices = @transform_2, window_bounds = array<i64: 1, 32>}, {transform_indices = @transform_3, window_bounds = array<i64: 32, 128>}, {transform_indices = @transform_4, window_bounds = array<i64: 16, 128>}]} {
    %c0_i32 = arith.constant 0 : i32
    %0 = arith.cmpi eq, %arg1, %c0_i32 : i32
    %1 = arith.extui %0 : i1 to i32
    %c0_i32_0 = arith.constant 0 : i32
    %2 = arith.cmpi ne, %1, %c0_i32_0 : i32
    scf.if %2 {
      %c0_6 = arith.constant 0 : index
      %c0_7 = arith.constant 0 : index
      %7 = vector.load %arg2[%c0_6, %c0_7] : memref<16x32xf32, #tpu.memory_space<vmem>>, vector<16x32xf32>
      %c0_8 = arith.constant 0 : index
      %c0_9 = arith.constant 0 : index
      %8 = vector.load %arg3[%c0_8, %c0_9] : memref<1x32xf32, #tpu.memory_space<vmem>>, vector<1x32xf32>
      %c0_10 = arith.constant 0 : index
      %c0_11 = arith.constant 0 : index
      %9 = vector.load %arg4[%c0_10, %c0_11] : memref<1x32xf32, #tpu.memory_space<vmem>>, vector<1x32xf32>
      %cst_12 = arith.constant dense<0.000000e+00> : vector<16xf32>
      %10 = vector.multi_reduction <add>, %7, %cst_12 [1] : vector<16x32xf32> to vector<16xf32>
      %11 = vector.shape_cast %10 : vector<16xf32> to vector<16x1xf32>
      %cst_13 = arith.constant 3.200000e+01 : f32
      %12 = vector.broadcast %cst_13 : f32 to vector<16x1xf32>
      %13 = arith.divf %11, %12 : vector<16x1xf32>
      %14 = vector.broadcast %13 : vector<16x1xf32> to vector<16x32xf32>
      %15 = arith.subf %7, %14 : vector<16x32xf32>
      %16 = arith.mulf %15, %15 : vector<16x32xf32>
      %cst_14 = arith.constant dense<0.000000e+00> : vector<16xf32>
      %17 = vector.multi_reduction <add>, %16, %cst_14 [1] : vector<16x32xf32> to vector<16xf32>
      %18 = vector.shape_cast %17 : vector<16xf32> to vector<16x1xf32>
      %cst_15 = arith.constant 3.200000e+01 : f32
      %19 = vector.broadcast %cst_15 : f32 to vector<16x1xf32>
      %20 = arith.divf %18, %19 : vector<16x1xf32>
      %21 = vector.broadcast %13 : vector<16x1xf32> to vector<16x32xf32>
      %22 = arith.subf %7, %21 : vector<16x32xf32>
      %cst_16 = arith.constant 9.99999974E-6 : f32
      %23 = vector.broadcast %cst_16 : f32 to vector<16x1xf32>
      %24 = arith.addf %20, %23 : vector<16x1xf32>
      %25 = math.rsqrt %24 : vector<16x1xf32>
      %26 = vector.broadcast %25 : vector<16x1xf32> to vector<16x32xf32>
      %27 = arith.mulf %22, %26 : vector<16x32xf32>
      %28 = vector.broadcast %8 : vector<1x32xf32> to vector<16x32xf32>
      %29 = arith.mulf %27, %28 : vector<16x32xf32>
      %30 = vector.broadcast %9 : vector<1x32xf32> to vector<16x32xf32>
      %31 = arith.addf %29, %30 : vector<16x32xf32>
      %32 = arith.truncf %31 : vector<16x32xf32> to vector<16x32xbf16>
      %c0_17 = arith.constant 0 : index
      %c0_18 = arith.constant 0 : index
      %33 = vector.load %arg7[%c0_17, %c0_18] : memref<16x32xbf16, #tpu.memory_space<vmem>>, vector<16x32xbf16>
      tpu.vector_store %arg7[%c0_17, %c0_18], %32 {strides = array<i32>} : memref<16x32xbf16, #tpu.memory_space<vmem>>, vector<16x32xbf16>,
    } else {
    }
    %c0 = arith.constant 0 : index
    %c0_1 = arith.constant 0 : index
    %3 = vector.load %arg7[%c0, %c0_1] : memref<16x32xbf16, #tpu.memory_space<vmem>>, vector<16x32xbf16>
    %c0_2 = arith.constant 0 : index
    %c0_3 = arith.constant 0 : index
    %4 = vector.load %arg5[%c0_2, %c0_3] : memref<32x128xbf16, #tpu.memory_space<vmem>>, vector<32x128xbf16>
    %cst = arith.constant dense<0.000000e+00> : vector<16x128xf32>
    %5 = tpu.matmul %3, %4, %cst {dimension_numbers = #tpu.dot_dimension_numbers<[1], [0], [0], [1], [0, 0, 1, 1], [], []>} : vector<16x32xbf16>, vector<32x128xbf16>, vector<16x128xf32> -> vector<16x128xf32>
    %c0_4 = arith.constant 0 : index
    %c0_5 = arith.constant 0 : index
    %6 = vector.load %arg6[%c0_4, %c0_5] : memref<16x128xf32, #tpu.memory_space<vmem>>, vector<16x128xf32>
    tpu.vector_store %arg6[%c0_4, %c0_5], %5 {strides = array<i32>} : memref<16x128xf32, #tpu.memory_space<vmem>>, vector<16x128xf32>,
    return
  }
  func.func @transform_0(%arg0: i32, %arg1: i32) -> (i32, i32) {
    %c0_i32 = arith.constant 0 : i32
    %c0_i32_0 = arith.constant 0 : i32
    return %arg0, %c0_i32 : i32, i32
  }
  func.func @transform_1(%arg0: i32, %arg1: i32) -> (i32, i32) {
    %c0_i32 = arith.constant 0 : i32
    %c0_i32_0 = arith.constant 0 : i32
    %c0_i32_1 = arith.constant 0 : i32
    return %c0_i32, %c0_i32_0 : i32, i32
  }
  func.func @transform_2(%arg0: i32, %arg1: i32) -> (i32, i32) {
    %c0_i32 = arith.constant 0 : i32
    %c0_i32_0 = arith.constant 0 : i32
    %c0_i32_1 = arith.constant 0 : i32
    return %c0_i32, %c0_i32_0 : i32, i32
  }
  func.func @transform_3(%arg0: i32, %arg1: i32) -> (i32, i32) {
    %c0_i32 = arith.constant 0 : i32
    %c0_i32_0 = arith.constant 0 : i32
    return %c0_i32, %arg1 : i32, i32
  }
  func.func @transform_4(%arg0: i32, %arg1: i32) -> (i32, i32) {
    %c0_i32 = arith.constant 0 : i32
    return %arg0, %arg1 : i32, i32
  }
}

module attributes {stable_mosaic.version = 11 : i64} {
  func.func @ff_block_kernel(%arg0: i32, %arg1: i32, %arg2: memref<16x32xf32, #tpu.memory_space<vmem>>, %arg3: memref<1x32xf32, #tpu.memory_space<vmem>>, %arg4: memref<1x32xf32, #tpu.memory_space<vmem>>, %arg5: memref<32x128xbf16, #tpu.memory_space<vmem>>, %arg6: memref<1x128xf32, #tpu.memory_space<vmem>>, %arg7: memref<128x32xbf16, #tpu.memory_space<vmem>>, %arg8: memref<1x32xf32, #tpu.memory_space<vmem>>, %arg9: memref<16x32xf32, #tpu.memory_space<vmem>>, %arg10: memref<16x32xbf16, #tpu.memory_space<vmem>>, %arg11: memref<16x32xf32, #tpu.memory_space<vmem>>) attributes {dimension_semantics = [#tpu.dimension_semantics<parallel>, #tpu.dimension_semantics<arbitrary>], iteration_bounds = array<i64: 1, 1>, scalar_prefetch = 0 : i64, scratch_operands = 2 : i64, tpu.core_type = #tpu.core_type<tc>, window_params = [{transform_indices = @transform_0, window_bounds = array<i64: 16, 32>}, {pipeline_mode = #tpu.pipeline_mode<synchronous>, transform_indices = @transform_1, window_bounds = array<i64: 1, 32>}, {pipeline_mode = #tpu.pipeline_mode<synchronous>, transform_indices = @transform_2, window_bounds = array<i64: 1, 32>}, {transform_indices = @transform_3, window_bounds = array<i64: 32, 128>}, {transform_indices = @transform_4, window_bounds = array<i64: 1, 128>}, {transform_indices = @transform_5, window_bounds = array<i64: 128, 32>}, {pipeline_mode = #tpu.pipeline_mode<synchronous>, transform_indices = @transform_6, window_bounds = array<i64: 1, 32>}, {transform_indices = @transform_7, window_bounds = array<i64: 16, 32>}]} {
    %c0_i32 = arith.constant 0 : i32
    %0 = arith.cmpi eq, %arg1, %c0_i32 : i32
    %1 = arith.extui %0 : i1 to i32
    %c0_i32_0 = arith.constant 0 : i32
    %2 = arith.cmpi ne, %1, %c0_i32_0 : i32
    scf.if %2 {
      %c0_19 = arith.constant 0 : index
      %c0_20 = arith.constant 0 : index
      %32 = vector.load %arg2[%c0_19, %c0_20] : memref<16x32xf32, #tpu.memory_space<vmem>>, vector<16x32xf32>
      %c0_21 = arith.constant 0 : index
      %c0_22 = arith.constant 0 : index
      %33 = vector.load %arg3[%c0_21, %c0_22] : memref<1x32xf32, #tpu.memory_space<vmem>>, vector<1x32xf32>
      %c0_23 = arith.constant 0 : index
      %c0_24 = arith.constant 0 : index
      %34 = vector.load %arg4[%c0_23, %c0_24] : memref<1x32xf32, #tpu.memory_space<vmem>>, vector<1x32xf32>
      %cst_25 = arith.constant dense<0.000000e+00> : vector<16xf32>
      %35 = vector.multi_reduction <add>, %32, %cst_25 [1] : vector<16x32xf32> to vector<16xf32>
      %36 = vector.shape_cast %35 : vector<16xf32> to vector<16x1xf32>
      %cst_26 = arith.constant 3.200000e+01 : f32
      %37 = vector.broadcast %cst_26 : f32 to vector<16x1xf32>
      %38 = arith.divf %36, %37 : vector<16x1xf32>
      %39 = vector.broadcast %38 : vector<16x1xf32> to vector<16x32xf32>
      %40 = arith.subf %32, %39 : vector<16x32xf32>
      %41 = arith.mulf %40, %40 : vector<16x32xf32>
      %cst_27 = arith.constant dense<0.000000e+00> : vector<16xf32>
      %42 = vector.multi_reduction <add>, %41, %cst_27 [1] : vector<16x32xf32> to vector<16xf32>
      %43 = vector.shape_cast %42 : vector<16xf32> to vector<16x1xf32>
      %cst_28 = arith.constant 3.200000e+01 : f32
      %44 = vector.broadcast %cst_28 : f32 to vector<16x1xf32>
      %45 = arith.divf %43, %44 : vector<16x1xf32>
      %46 = vector.broadcast %38 : vector<16x1xf32> to vector<16x32xf32>
      %47 = arith.subf %32, %46 : vector<16x32xf32>
      %cst_29 = arith.constant 9.99999974E-6 : f32
      %48 = vector.broadcast %cst_29 : f32 to vector<16x1xf32>
      %49 = arith.addf %45, %48 : vector<16x1xf32>
      %50 = math.rsqrt %49 : vector<16x1xf32>
      %51 = vector.broadcast %50 : vector<16x1xf32> to vector<16x32xf32>
      %52 = arith.mulf %47, %51 : vector<16x32xf32>
      %53 = vector.broadcast %33 : vector<1x32xf32> to vector<16x32xf32>
      %54 = arith.mulf %52, %53 : vector<16x32xf32>
      %55 = vector.broadcast %34 : vector<1x32xf32> to vector<16x32xf32>
      %56 = arith.addf %54, %55 : vector<16x32xf32>
      %57 = arith.truncf %56 : vector<16x32xf32> to vector<16x32xbf16>
      %c0_30 = arith.constant 0 : index
      %c0_31 = arith.constant 0 : index
      %58 = vector.load %arg10[%c0_30, %c0_31] : memref<16x32xbf16, #tpu.memory_space<vmem>>, vector<16x32xbf16>
      tpu.vector_store %arg10[%c0_30, %c0_31], %57 {strides = array<i32>} : memref<16x32xbf16, #tpu.memory_space<vmem>>, vector<16x32xbf16>,
      %c0_32 = arith.constant 0 : index
      %c0_33 = arith.constant 0 : index
      %59 = vector.load %arg8[%c0_32, %c0_33] : memref<1x32xf32, #tpu.memory_space<vmem>>, vector<1x32xf32>
      %60 = vector.broadcast %59 : vector<1x32xf32> to vector<16x32xf32>
      %61 = arith.addf %32, %60 : vector<16x32xf32>
      %c0_34 = arith.constant 0 : index
      %c0_35 = arith.constant 0 : index
      %62 = vector.load %arg11[%c0_34, %c0_35] : memref<16x32xf32, #tpu.memory_space<vmem>>, vector<16x32xf32>
      tpu.vector_store %arg11[%c0_34, %c0_35], %61 {strides = array<i32>} : memref<16x32xf32, #tpu.memory_space<vmem>>, vector<16x32xf32>,
    } else {
    }
    %c0 = arith.constant 0 : index
    %c0_1 = arith.constant 0 : index
    %3 = vector.load %arg10[%c0, %c0_1] : memref<16x32xbf16, #tpu.memory_space<vmem>>, vector<16x32xbf16>
    %c0_2 = arith.constant 0 : index
    %c0_3 = arith.constant 0 : index
    %4 = vector.load %arg5[%c0_2, %c0_3] : memref<32x128xbf16, #tpu.memory_space<vmem>>, vector<32x128xbf16>
    %cst = arith.constant dense<0.000000e+00> : vector<16x128xf32>
    %5 = tpu.matmul %3, %4, %cst {dimension_numbers = #tpu.dot_dimension_numbers<[1], [0], [0], [1], [0, 0, 1, 1], [], []>} : vector<16x32xbf16>, vector<32x128xbf16>, vector<16x128xf32> -> vector<16x128xf32>
    %c0_4 = arith.constant 0 : index
    %c0_5 = arith.constant 0 : index
    %6 = vector.load %arg6[%c0_4, %c0_5] : memref<1x128xf32, #tpu.memory_space<vmem>>, vector<1x128xf32>
    %7 = vector.broadcast %6 : vector<1x128xf32> to vector<16x128xf32>
    %8 = arith.addf %5, %7 : vector<16x128xf32>
    %cst_6 = arith.constant 5.000000e-01 : f32
    %9 = vector.broadcast %cst_6 : f32 to vector<16x128xf32>
    %10 = arith.mulf %9, %8 : vector<16x128xf32>
    %cst_7 = arith.constant 0.636619746 : f32
    %11 = math.sqrt %cst_7 : f32
    %cst_8 = arith.constant 4.471500e-02 : f32
    %12 = vector.broadcast %cst_8 : f32 to vector<16x128xf32>
    %13 = arith.mulf %12, %8 : vector<16x128xf32>
    %14 = arith.mulf %13, %8 : vector<16x128xf32>
    %15 = arith.mulf %14, %8 : vector<16x128xf32>
    %16 = arith.addf %8, %15 : vector<16x128xf32>
    %17 = vector.broadcast %11 : f32 to vector<16x128xf32>
    %18 = arith.mulf %17, %16 : vector<16x128xf32>
    %19 = math.tanh %18 : vector<16x128xf32>
    %cst_9 = arith.constant 1.000000e+00 : f32
    %20 = vector.broadcast %cst_9 : f32 to vector<16x128xf32>
    %21 = arith.addf %20, %19 : vector<16x128xf32>
    %22 = arith.mulf %10, %21 : vector<16x128xf32>
    %23 = arith.truncf %22 : vector<16x128xf32> to vector<16x128xbf16>
    %c0_10 = arith.constant 0 : index
    %c0_11 = arith.constant 0 : index
    %24 = vector.load %arg11[%c0_10, %c0_11] : memref<16x32xf32, #tpu.memory_space<vmem>>, vector<16x32xf32>
    %c0_12 = arith.constant 0 : index
    %c0_13 = arith.constant 0 : index
    %25 = vector.load %arg7[%c0_12, %c0_13] : memref<128x32xbf16, #tpu.memory_space<vmem>>, vector<128x32xbf16>
    %cst_14 = arith.constant dense<0.000000e+00> : vector<16x32xf32>
    %26 = tpu.matmul %23, %25, %cst_14 {dimension_numbers = #tpu.dot_dimension_numbers<[1], [0], [0], [1], [0, 0, 1, 1], [], []>} : vector<16x128xbf16>, vector<128x32xbf16>, vector<16x32xf32> -> vector<16x32xf32>
    %27 = arith.addf %24, %26 : vector<16x32xf32>
    %c0_15 = arith.constant 0 : index
    %c0_16 = arith.constant 0 : index
    %28 = vector.load %arg11[%c0_15, %c0_16] : memref<16x32xf32, #tpu.memory_space<vmem>>, vector<16x32xf32>
    tpu.vector_store %arg11[%c0_15, %c0_16], %27 {strides = array<i32>} : memref<16x32xf32, #tpu.memory_space<vmem>>, vector<16x32xf32>,
    %c0_i32_17 = arith.constant 0 : i32
    %29 = arith.cmpi eq, %arg1, %c0_i32_17 : i32
    %30 = arith.extui %29 : i1 to i32
    %c0_i32_18 = arith.constant 0 : i32
    %31 = arith.cmpi ne, %30, %c0_i32_18 : i32
    scf.if %31 {
      %c0_19 = arith.constant 0 : index
      %c0_20 = arith.constant 0 : index
      %32 = vector.load %arg11[%c0_19, %c0_20] : memref<16x32xf32, #tpu.memory_space<vmem>>, vector<16x32xf32>
      %c0_21 = arith.constant 0 : index
      %c0_22 = arith.constant 0 : index
      %33 = vector.load %arg9[%c0_21, %c0_22] : memref<16x32xf32, #tpu.memory_space<vmem>>, vector<16x32xf32>
      tpu.vector_store %arg9[%c0_21, %c0_22], %32 {strides = array<i32>} : memref<16x32xf32, #tpu.memory_space<vmem>>, vector<16x32xf32>,
    } else {
    }
    return
  }
  func.func @transform_0(%arg0: i32, %arg1: i32) -> (i32, i32) {
    %c0_i32 = arith.constant 0 : i32
    %c0_i32_0 = arith.constant 0 : i32
    return %arg0, %c0_i32 : i32, i32
  }
  func.func @transform_1(%arg0: i32, %arg1: i32) -> (i32, i32) {
    %c0_i32 = arith.constant 0 : i32
    %c0_i32_0 = arith.constant 0 : i32
    %c0_i32_1 = arith.constant 0 : i32
    return %c0_i32, %c0_i32_0 : i32, i32
  }
  func.func @transform_2(%arg0: i32, %arg1: i32) -> (i32, i32) {
    %c0_i32 = arith.constant 0 : i32
    %c0_i32_0 = arith.constant 0 : i32
    %c0_i32_1 = arith.constant 0 : i32
    return %c0_i32, %c0_i32_0 : i32, i32
  }
  func.func @transform_3(%arg0: i32, %arg1: i32) -> (i32, i32) {
    %c0_i32 = arith.constant 0 : i32
    %c0_i32_0 = arith.constant 0 : i32
    return %c0_i32, %arg1 : i32, i32
  }
  func.func @transform_4(%arg0: i32, %arg1: i32) -> (i32, i32) {
    %c0_i32 = arith.constant 0 : i32
    %c0_i32_0 = arith.constant 0 : i32
    return %c0_i32, %arg1 : i32, i32
  }
  func.func @transform_5(%arg0: i32, %arg1: i32) -> (i32, i32) {
    %c0_i32 = arith.constant 0 : i32
    %c0_i32_0 = arith.constant 0 : i32
    return %arg1, %c0_i32 : i32, i32
  }
  func.func @transform_6(%arg0: i32, %arg1: i32) -> (i32, i32) {
    %c0_i32 = arith.constant 0 : i32
    %c0_i32_0 = arith.constant 0 : i32
    %c0_i32_1 = arith.constant 0 : i32
    return %c0_i32, %c0_i32_0 : i32, i32
  }
  func.func @transform_7(%arg0: i32, %arg1: i32) -> (i32, i32) {
    %c0_i32 = arith.constant 0 : i32
    %c0_i32_0 = arith.constant 0 : i32
    return %arg0, %c0_i32 : i32, i32
  }
}

</mosaic_0001>

<bundles_post_ra>
// kernel: gpt2_forward.6
= control target key start
LH: loop header
LB: loop body
LE: loop exit
PB: predicated region body
PF: predicated region fallthrough
CT: control target
= control target key end

     0   :  { %vm35_vm0 = vcmask 261120   ;;  %v377_v18 = vmov 0.0   ;;  %vm378_vm1 = vmmov 0   ;;  %s485_s0 = inlined_call_operand.vmem [shape: f32[16,32], index: 0, kind: input, shape index: {}]   ;;  %s486_s6 = inlined_call_operand.vmem [shape: f32[1,32], index: 6, kind: input, shape index: {}]   ;;  %s487_s3 = inlined_call_operand.vmem [shape: bf16[32,128], index: 3, kind: input, shape index: {}]   ;;  %s488_s1 = inlined_call_operand.vmem [shape: f32[1,32], index: 1, kind: input, shape index: {}]   ;;  %s489_s2 = inlined_call_operand.vmem [shape: f32[1,32], index: 2, kind: input, shape index: {}]   ;;  %s490_s5 = inlined_call_operand.vmem [shape: bf16[128,32], index: 5, kind: input, shape index: {}]   ;;  %s491_s4 = inlined_call_operand.vmem [shape: f32[1,128], index: 4, kind: input, shape index: {}]   ;;  %s492_s7 = inlined_call_operand.vmem [shape: f32[16,32], index: 7, kind: output, shape index: {}]  }
   0x1   :  { %v31_v0 = vld [vmem:[%s485_s0] sm:$0xff]  ;;  %v32_v2 = vld [vmem:[%s485_s0 + $0x8] sm:$0xff]  ;;  %329 = vmatprep.subr.bf16.mxu0 %v377_v18  ;;  %337 = vmatprep.subr.bf16.mxu1 %v377_v18  ;;  %v363_v40 = vld [vmem:[%s490_s5 + $0x10] sm:$0xff]  }
   0x2   :  { %v304_v1 = vld [vmem:[%s486_s6] ss:$0 sm:$0xff]  ;;  %v36_v3 = vsel %vm35_vm0, %v31_v0, 0.0  ;;  %v39_v6 = vsel %vm35_vm0, %v32_v2, 0.0  ;;  %v360_v19 = vld [vmem:[%s487_s3 + $0x8] sm:$0xff]   ;;  %333 = vmatprep.mubr.msk.bf16.mxu0 %vm378_vm1, %v377_v18  ;;  %353 = vmatprep.mubr.msk.bf16.mxu1 %vm378_vm1, %v377_v18  ;;  %v364_v41 = vld [vmem:[%s490_s5 + $0x18] sm:$0xff]  }
   0x3   :  { %v88_v4 = vadd.f32 %v304_v1, %v31_v0  ;;  %v89_v5 = vadd.f32 %v304_v1, %v32_v2  ;;  %37 = vadd.xlane.f32.xlu0 %v36_v3  ;;  %v359_v17 = vld [vmem:[%s487_s3] sm:$0xff]   ;;  %v362_v39 = vld [vmem:[%s490_s5 + $0x8] sm:$0xff]   ;;  %v367_v44 = vld [vmem:[%s490_s5 + $0x30] sm:$0xff]  }
   0x4   :  { %330 = vmatpush3.bf16.msra.mxu0 %v359_v17  ;;  %v302_v28 = vld [vmem:[%s488_s1] ss:$0 sm:$0xff]  ;;  %v366_v43 = vld [vmem:[%s490_s5 + $0x28] sm:$0xff]   ;;  %v368_v45 = vld [vmem:[%s490_s5 + $0x38] sm:$0xff]  }
   0x5   :  { %90 = vst.msk [vmem:[#allocation3] sm:$0xff] %vm35_vm0, %v88_v4  ;;  %91 = vst.msk [vmem:[#allocation3 + $0x8] sm:$0xff] %vm35_vm0, %v89_v5  ;;  %331 = vmatprep.subr.bf16.mxu0 %v377_v18  ;;  %v303_v32 = vld [vmem:[%s489_s2] ss:$0 sm:$0xff] }
   0x6   :  { %v361_v38 = vld [vmem:[%s490_s5] sm:$0xff]  }
   0x7   :  { %40 = vadd.xlane.f32.xlu0 %v39_v6  ;;  %338 = vmatpush3.bf16.msra.mxu1 %v361_v38  ;;  %v365_v42 = vld [vmem:[%s490_s5 + $0x20] sm:$0xff]  }
   0x8   :  { %332 = vmatpush3.bf16.msra.mxu0 %v360_v19  ;;  %339 = vmatprep.subr.bf16.mxu1 %v377_v18  ;;  %v305_v46 = vld [vmem:[%s491_s4] ss:$0 sm:$0xff] }
   0xb   :  { %340 = vmatpush3.bf16.msra.mxu1 %v362_v39 }
   0xc   :  { %341 = vmatprep.subr.bf16.mxu1 %v377_v18 }
   0xf   :  { %342 = vmatpush3.bf16.msra.mxu1 %v363_v40 }
  0x10   :  { %343 = vmatprep.subr.bf16.mxu1 %v377_v18 }
  0x13   :  { %344 = vmatpush3.bf16.msra.mxu1 %v364_v41 }
  0x14   :  { %345 = vmatprep.subr.bf16.mxu1 %v377_v18 }
  0x17   :  { %346 = vmatpush3.bf16.msra.mxu1 %v365_v42 }
  0x18   :  { %347 = vmatprep.subr.bf16.mxu1 %v377_v18 }
  0x1b   :  { %348 = vmatpush3.bf16.msra.mxu1 %v366_v43 }
  0x1c   :  { %349 = vmatprep.subr.bf16.mxu1 %v377_v18 }
  0x1f   :  { %350 = vmatpush3.bf16.msra.mxu1 %v367_v44 }
  0x20   :  { %351 = vmatprep.subr.bf16.mxu1 %v377_v18 }
  0x23   :  { %352 = vmatpush3.bf16.msra.mxu1 %v368_v45 }
  0x90   :  { %v38_v7 = vpop.xlane.xlu0 %37 }
  0x91   :  { %v43_v8 = vmul.f32 0.03125, %v38_v7 }
  0x93   :  { %v45_v9 = vsub.f32 %v31_v0, %v43_v8  ;;  %v180_v8 = vld [vmem:[#allocation3] sm:$0xff] }
  0x94   :  { %v41_v10 = vpop.xlane.xlu0 %40 }
  0x95   :  { %v44_v11 = vmul.f32 0.03125, %v41_v10  ;;  %v47_v12 = vmul.f32 %v45_v9, %v45_v9  ;;  %v181_v10 = vld [vmem:[#allocation3 + $0x8] sm:$0xff] }
  0x97   :  { %v46_v13 = vsub.f32 %v32_v2, %v44_v11  ;;  %v49_v14 = vsel %vm35_vm0, %v47_v12, 0.0 }
  0x98   :  { %50 = vadd.xlane.f32.xlu1 %v49_v14 }
  0x99   :  { %v48_v15 = vmul.f32 %v46_v13, %v46_v13 }
  0x9b   :  { %v52_v16 = vsel %vm35_vm0, %v48_v15, 0.0 }
  0x9c   :  { %53 = vadd.xlane.f32.xlu1 %v52_v16 }
 0x125   :  { %v51_v20 = vpop.xlane.xlu1 %50 }
 0x126   :  { %v55_v21 = vmul.f32 0.03125, %v51_v20 }
 0x128   :  { %v57_v22 = vadd.f32 1e-05, %v55_v21 }
 0x129   :  { %v54_v23 = vpop.xlane.xlu1 %53 }
 0x12a   :  { %369 = vrsqrt.f32 %v57_v22  ;;  %v56_v24 = vmul.f32 0.03125, %v54_v23 }
 0x12c   :  { %v58_v25 = vadd.f32 1e-05, %v56_v24 }
 0x12e   :  { %371 = vrsqrt.f32 %v58_v25 }
 0x134   :  { %v370_v26 = vpop.eup %369 }
 0x135   :  { %v61_v27 = vmul.f32 %v370_v26, %v45_v9 }
 0x137   :  { %v69_v30 = vmul.f32 %v302_v28, %v61_v27 }
 0x138   :  { %v372_v29 = vpop.eup %371 }
 0x139   :  { %v62_v31 = vmul.f32 %v372_v29, %v46_v13  ;;  %v77_v34 = vadd.f32 %v303_v32, %v69_v30 }
 0x13b   :  { %v70_v33 = vmul.f32 %v302_v28, %v62_v31 }
 0x13d   :  { %v78_v35 = vadd.f32 %v303_v32, %v70_v33 }
 0x13f   :  { %v79_v36 = vpack.c.bf16 %v78_v35, %v77_v34 }
 0x141   :  { %80 = vst.msk [vmem:[#allocation2] sm:$0xff] %vm35_vm0, %v79_v36 }
 0x148   :  { %v92_v37 = vld [vmem:[#allocation2] sm:$0xff] }
 0x149   :  { %334 = vmatmul.mubr.msk.bf16.vlgmr.msra.gmra.mrb[0].mxu0 %vm35_vm0, %v92_v37 }
 0x21c   :  { %v154_v47 = vpop.f32.mrb[0].mxu0 }
 0x21d   :  { %v155_v48 = vadd.f32 %v305_v46, %v154_v47  ;;  %v335_v49 = vpop.f32.mrb[1].mxu0 }
 0x21e   :  { %v157_v50 = vpop.f32.mrb[2].mxu0 }
 0x21f   :  { %v163_v51 = vmul.f32 0.044715, %v155_v48  ;;  %v158_v52 = vadd.f32 %v305_v46, %v157_v50  ;;  %v336_v53 = vpop.f32.mrb[3].mxu0  ;;  %v161_v2 = vmul.f32 0.5, %v155_v48 }
 0x221   :  { %v165_v54 = vmul.f32 %v163_v51, %v155_v48  ;;  %v164_v55 = vmul.f32 0.044715, %v158_v52  ;;  %v162_v3 = vmul.f32 0.5, %v158_v52 }
 0x223   :  { %v167_v56 = vmul.f32 %v165_v54, %v155_v48  ;;  %v166_v57 = vmul.f32 %v164_v55, %v158_v52 }
 0x225   :  { %v168_v58 = vmul.f32 %v166_v57, %v158_v52  ;;  %v169_v59 = vadd.f32 %v167_v56, %v155_v48 }
 0x227   :  { %v170_v60 = vadd.f32 %v168_v58, %v158_v52  ;;  %v171_v61 = vmul.f32 0.7978845, %v169_v59 }
 0x229   :  { %v172_v62 = vmul.f32 0.7978845, %v170_v60  ;;  %373 = vtanh.f32 %v171_v61 }
 0x22b   :  { %375 = vtanh.f32 %v172_v62 }
 0x233   :  { %v374_v63 = vpop.eup %373 }
 0x234   :  { %v175_v0 = vadd.f32 1.0, %v374_v63 }
 0x235   :  { %v376_v1 = vpop.eup %375 }
 0x236   :  { %v176_v4 = vadd.f32 1.0, %v376_v1  ;;  %v177_v5 = vmul.f32 %v175_v0, %v161_v2 }
 0x238   :  { %v178_v6 = vmul.f32 %v176_v4, %v162_v3 }
 0x23a   :  { %v179_v7 = vpack.c.bf16 %v178_v6, %v177_v5 }
 0x23c   :  { %354 = vmatmul.mubr.bf16.vlgmr.msra.gmra.mrb[0].mxu1 %v179_v7 }
 0x30f   :  { %v280_v9 = vpop.f32.mrb[0].mxu1 }
 0x310   :  { %v287_v11 = vadd.f32 %v280_v9, %v180_v8  ;;  %v355_v12 = vpop.f32.mrb[1].mxu1 }
 0x311   :  { %v283_v13 = vpop.f32.mrb[2].mxu1 }
 0x312   :  { %289 = vst.msk [vmem:[#allocation3] sm:$0xff] %vm35_vm0, %v287_v11  ;;  %v288_v14 = vadd.f32 %v283_v13, %v181_v10  ;;  %v356_v15 = vpop.f32.mrb[3].mxu1 }
 0x314   :  { %290 = vst.msk [vmem:[#allocation3 + $0x8] sm:$0xff] %vm35_vm0, %v288_v14 }
 0x319   :  { %v294_v16 = vld [vmem:[#allocation3] sm:$0xff] }
 0x31a   :  { %296 = vst.msk [vmem:[%s492_s7] sm:$0xff] %vm35_vm0, %v294_v16 }
 0x31b   :  { %v295_v17 = vld [vmem:[#allocation3 + $0x8] sm:$0xff] }
 0x31c   :  { %297 = vst.msk [vmem:[%s492_s7 + $0x8] sm:$0xff] %vm35_vm0, %v295_v17 }

// kernel: gpt2_forward.9
= control target key start
LH: loop header
LB: loop body
LE: loop exit
PB: predicated region body
PF: predicated region fallthrough
CT: control target
= control target key end

     0   :  { %vm27_vm0 = vcmask 261120   ;;  %s270_s0 = inlined_call_operand.vmem [shape: f32[16,32], index: 0, kind: input, shape index: {}]   ;;  %s271_s1 = inlined_call_operand.vmem [shape: f32[1,32], index: 1, kind: input, shape index: {}]   ;;  %s272_s2 = inlined_call_operand.vmem [shape: f32[1,32], index: 2, kind: input, shape index: {}]   ;;  %s273_s3 = inlined_call_operand.vmem [shape: bf16[32,128], index: 3, kind: input, shape index: {}]   ;;  %s274_s4 = inlined_call_operand.hbm [shape: f32[16,128], index: 4, kind: output, shape index: {}]  }
   0x1   :  { %v23_v0 = vld [vmem:[%s270_s0] sm:$0xff]  ;;  %v24_v1 = vld [vmem:[%s270_s0 + $0x8] sm:$0xff] }
   0x2   :  { %v28_v2 = vsel %vm27_vm0, %v23_v0, 0.0 }
   0x3   :  { %29 = vadd.xlane.f32.xlu0 %v28_v2 }
   0x4   :  { %9 = vsyncpa [#allocation4], 0  ;;  %v31_v3 = vsel %vm27_vm0, %v24_v1, 0.0  ;;  %v174_v14 = vld [vmem:[%s273_s3] sm:$0xff]   ;;  %v204_v15 = vmov 0.0   ;;  %v175_v16 = vld [vmem:[%s273_s3 + $0x8] sm:$0xff]  }
   0x5   :  { %161 = vmatprep.subr.bf16.mxu0 %v204_v15  ;;  %vm205_vm1 = vmmov 0   ;;  %v153_v25 = vld [vmem:[%s271_s1] ss:$0 sm:$0xff]  ;;  %s206_s25 = smov [#allocation3]  }
   0x6   :  { %162 = vmatpush3.bf16.msra.mxu0 %v174_v14  ;;  %165 = vmatprep.mubr.msk.bf16.mxu0 %vm205_vm1, %v204_v15  ;;  %v154_v29 = vld [vmem:[%s272_s2] ss:$0 sm:$0xff]  ;;  %s142_s26 = sshll.u32 %s206_s25, 4  ;;  %s143_s26 = int_to_ptr.vmem [resolvable:$true] %s142_s26 }
   0x7   :  { %32 = vadd.xlane.f32.xlu0 %v31_v3  ;;  %163 = vmatprep.subr.bf16.mxu0 %v204_v15  ;;  %s180_s1 = scalar_lea.vmem %s143_s26, 256  ;;  %p185_p1 = scmp.lt.s32.totalorder %s143_s26, %s143_s26 }
   0x8   :  { %p181_p0 = scmp.ne.s32.totalorder %s143_s26, %s180_s1  ;;  %p186_p2 = scmp.lt.s32.totalorder %s180_s1, %s180_s1 }
   0xa   :  { %164 = vmatpush3.bf16.msra.mxu0 %v175_v16  ;;  %p187_p3 = por %p186_p2, %p185_p1 }
   0xc   :  { %p188_p4 = pnand %p187_p3, %p181_p0 }
  0x90   :  { %v30_v4 = vpop.xlane.xlu0 %29 }
  0x91   :  { %v35_v5 = vmul.f32 0.03125, %v30_v4 }
  0x93   :  { %v37_v6 = vsub.f32 %v23_v0, %v35_v5 }
  0x94   :  { %v33_v7 = vpop.xlane.xlu0 %32 }
  0x95   :  { %v36_v8 = vmul.f32 0.03125, %v33_v7  ;;  %v39_v9 = vmul.f32 %v37_v6, %v37_v6 }
  0x97   :  { %v38_v10 = vsub.f32 %v24_v1, %v36_v8  ;;  %v41_v11 = vsel %vm27_vm0, %v39_v9, 0.0 }
  0x98   :  { %42 = vadd.xlane.f32.xlu1 %v41_v11 }
  0x99   :  { %v40_v12 = vmul.f32 %v38_v10, %v38_v10 }
  0x9b   :  { %v44_v13 = vsel %vm27_vm0, %v40_v12, 0.0 }
  0x9c   :  { %45 = vadd.xlane.f32.xlu1 %v44_v13 }
 0x125   :  { %v43_v17 = vpop.xlane.xlu1 %42 }
 0x126   :  { %v47_v18 = vmul.f32 0.03125, %v43_v17 }
 0x128   :  { %v49_v19 = vadd.f32 1e-05, %v47_v18 }
 0x129   :  { %v46_v20 = vpop.xlane.xlu1 %45 }
 0x12a   :  { %176 = vrsqrt.f32 %v49_v19  ;;  %v48_v21 = vmul.f32 0.03125, %v46_v20 }
 0x12c   :  { %v50_v22 = vadd.f32 1e-05, %v48_v21 }
 0x12e   :  { %178 = vrsqrt.f32 %v50_v22 }
 0x134   :  { %v177_v23 = vpop.eup %176 }
 0x135   :  { %v53_v24 = vmul.f32 %v177_v23, %v37_v6 }
 0x137   :  { %v61_v27 = vmul.f32 %v153_v25, %v53_v24 }
 0x138   :  { %v179_v26 = vpop.eup %178 }
 0x139   :  { %v54_v28 = vmul.f32 %v179_v26, %v38_v10  ;;  %v69_v31 = vadd.f32 %v154_v29, %v61_v27 }
 0x13b   :  { %v62_v30 = vmul.f32 %v153_v25, %v54_v28 }
 0x13d   :  { %v70_v32 = vadd.f32 %v154_v29, %v62_v30 }
 0x13f   :  { %v71_v33 = vpack.c.bf16 %v70_v32, %v69_v31 }
 0x141   :  { %72 = vst.msk [vmem:[#allocation2] sm:$0xff] %vm27_vm0, %v71_v33 }
 0x148   :  { %v73_v34 = vld [vmem:[#allocation2] sm:$0xff] }
 0x149   :  { %166 = vmatmul.mubr.msk.bf16.vlgmr.msra.gmra.mrb[0].mxu0 %vm27_vm0, %v73_v34 }
 0x21c   :  { %v128_v35 = vpop.f32.mrb[0].mxu0 }
 0x21d   :  { %135 = vst [vmem:[#allocation3] sm:$0xff] %v128_v35  ;;  %v167_v36 = vpop.f32.mrb[1].mxu0 }
 0x21e   :  { %v131_v37 = vpop.f32.mrb[2].mxu0 }
 0x21f   :  { %136 = vst [vmem:[#allocation3 + $0x8] sm:$0xff] %v131_v37  ;;  %v168_v38 = vpop.f32.mrb[3].mxu0 }
 0x220   :  { %191 = shalt.err (!%p188_p4)
}
 0x221   :  { %s192_s28 = scalar_lea.hbm %s274_s4, 256 }
 0x222   :  { %p193_p5 = scmp.ne.s32.totalorder %s274_s4, %s192_s28  ;;  %p196_p6 = scmp.lt.u32.totalorder %s192_s28, %s274_s4 }
 0x224   :  { %p198_p7 = pnand %p196_p6, %p193_p5 }
 0x226   :  { %201 = shalt.err (!%p198_p7)
}
 0x227   :  { %s207_s7 = smov 128   ;;  %s208_s8 = smov 8  }
 0x228   :  { %148 = dma.vmem_to_hbm [thread:$0]  %s143_s26, 256, %s274_s4, [#allocation4], %s207_s7, %s207_s7, %s208_s8  }
 0x229   :  { %202 = dma.done.wait [#allocation4], 256  }
 0x22a   :  { %203 = vsyncadd [#allocation4], 4294967040 }
 0x22b   :  { %152 = vsyncpa [#allocation4], 1 }

// kernel: gpt2_forward.5
= control target key start
LH: loop header
LB: loop body
LE: loop exit
PB: predicated region body
PF: predicated region fallthrough
CT: control target
= control target key end

     0   :  { %s2372_s21 = smov 0   ;;  %s2374_s22 = smov 0   ;;  %s2798_s0 = inlined_call_operand.vmem [shape: f32[2,8,32], index: 0, kind: input, shape index: {}]   ;;  %s2799_s1 = inlined_call_operand.vmem [shape: f32[1,32], index: 1, kind: input, shape index: {}]   ;;  %s2800_s2 = inlined_call_operand.vmem [shape: f32[1,32], index: 2, kind: input, shape index: {}]   ;;  %s2801_s3 = inlined_call_operand.vmem [shape: bf16[32,96], index: 3, kind: input, shape index: {}]   ;;  %s2802_s4 = inlined_call_operand.vmem [shape: bf16[32,32], index: 4, kind: input, shape index: {}]   ;;  %s2803_s5 = inlined_call_operand.vmem [shape: f32[1,32], index: 5, kind: input, shape index: {}]   ;;  %s2804_s6 = inlined_call_operand.vmem [shape: f32[2,8,32], index: 6, kind: output, shape index: {}]  }
   0x1   :  { %s2376_s23 = smov 0  }
   0x2 LB: > { %s28_s24 = sadd.s32 1, %s2264_s22  ;;  %p1876_p0 = scmp.ge.s32.totalorder %s2268_s23, 1  ;;  %s2268_s23 = sphi %s2376_s23, %s16_s23   ;;  %s2264_s22 = sphi %s2374_s22, %s2819_s22   ;;  %s2260_s21 = sphi %s2372_s21, %s2818_s21  }
   0x3   : > { %p30_p1 = scmp.ge.s32.totalorder %s28_s24, 2  ;;  %p225_p2 = scmp.lt.s32.totalorder %s2268_s23, 3 }
   0x5   : > { %s2821_s24 = smov (%p30_p1, %s28_s24), 0  ;;  %p226_p3 = pnand %p1876_p0, %p225_p2 }
   0x6   : > { %p256_p4 = scmp.lt.s32.totalorder (!%p226_p3), %s2260_s21, 1  ;;  %vm275_vm0 = vcmask (!%p226_p3), 261120   ;;  %v2160_v2 = vld [vmem:[%s2801_s3] sm:$0xff] (!%p226_p3)   ;;  %s2322_s10 = smov (!%p226_p3), 96   ;;  %v2163_v4 = vld [vmem:[%s2801_s3 + $0x8] sm:$0xff] (!%p226_p3)   ;;  %v2324_v13 = vmov (!%p226_p3), 0.0   ;;  %v376_v46 = vlaneseq (!%p226_p3) }
   0x7   : > { %229 = sbr.rel (%p226_p3) target bundleno = 1692 (0x69c), region = 44  ;;  %557 = vrot.lane.b32.xlu1 (!%p226_p3), %v2160_v2, %s2322_s10  ;;  %v2162_v3 = vld [vmem:[%s2801_s3] sm:$0xff] (!%p226_p3)   ;;  %s2323_s13 = smov (!%p226_p3), 64   ;;  %v2161_v10 = vld [vmem:[%s2801_s3 + $0x8] sm:$0xff] (!%p226_p3)   ;;  %1937 = vmatprep.subr.bf16.mxu0 (!%p226_p3), %v2324_v13  ;;  %vm2325_vm1 = vmmov (!%p226_p3), 0   ;;  %vm538_vm2 = vcmask (!%p226_p3), 60416  }
   0x8   : > { %v2164_v12 = vld [vmem:[%s2801_s3] sm:$0xff] (!%p226_p3)   ;;  %1945 = vmatprep.subr.bf16.mxu1 (!%p226_p3), %v2324_v13  ;;  %v2165_v14 = vld [vmem:[%s2801_s3 + $0x8] sm:$0xff] (!%p226_p3)   ;;  %1941 = vmatprep.mubr.msk.bf16.mxu0 (!%p226_p3), %vm2325_vm1, %v2324_v13  ;;  %s2326_s30 = smov (!%p226_p3), 104   ;;  %s2327_s8 = smov (!%p226_p3), 120   ;;  %v2329_v44 = vmov (!%p226_p3), 1983009808  }
   0x9   : > { %1938 = vmatpush3.bf16.msra.mxu0 (!%p226_p3), %v2164_v12  ;;  %1949 = vmatprep.mubr.msk.bf16.mxu1 (!%p226_p3), %vm2325_vm1, %v2324_v13  ;;  %v1879_v20 = vld [vmem:[%s2799_s1] ss:$0 sm:$0xff] (!%p226_p3)  ;;  %s2328_s9 = smov (!%p226_p3), 112   ;;  %v374_v45 = vunpack.c.l.s4 (!%p226_p3), %v2329_v44  ;;  %v2330_v47 = vmov (!%p226_p3), 1934713408   ;;  %v2448_v50 = vshrl.u32 (!%p226_p3), %v376_v46, 7 }
   0xa   : > { %1939 = vmatprep.subr.bf16.mxu0 (!%p226_p3), %v2324_v13  ;;  %v1880_v22 = vld [vmem:[%s2800_s2] ss:$0 sm:$0xff] (!%p226_p3)  ;;  %v391_v48 = vunpack.c.l.s4 (!%p226_p3), %v2330_v47 }
   0xb   : > { %794 = vrot.lane.b32.xlu1 (!%p226_p3), %v2162_v3, %s2323_s13  ;;  %v375_v49 = vunpack.c.0.s8 (!%p226_p3), %v374_v45 }
   0xc   : > { %v392_v51 = vunpack.c.0.s8 (!%p226_p3), %v391_v48 }
   0xd   : > { %1940 = vmatpush3.bf16.msra.mxu0 (!%p226_p3), %v2165_v14  ;;  %v2451_v52 = vsub.s32 (!%p226_p3), %v375_v49, %v2448_v50 }
   0xe   : > { %s2823_s21 = smov (!%p256_p4, %s2260_s21), 1  ;;  %1953 = vmatprep.subr.bf16.mxu0 %v2324_v13  ;;  %v2455_v56 = vsub.s32 %v392_v51, %v2448_v50 }
   0xf   : > { %s1877_s25 = sshll.u32 %s2823_s21, 3  ;;  %796 = vrot.lane.b32.xlu1 %v2163_v4, %s2323_s13 }
  0x10   : > { %s2393_s28 = scalar_lea.vmem %s2798_s0, %s1877_s25  ;;  %s2398_s7 = scalar_lea.vmem %s2804_s6, %s1877_s25 }
  0x11   : > { %v272_v0 = vld [vmem:[%s2393_s28] sm:$0xff] }
  0x12   : > { %v276_v1 = vsel %vm275_vm0, %v272_v0, 0.0 }
  0x13   : > { %277 = vadd.xlane.f32.xlu0 %v276_v1 }
  0x79   : > { %v558_v11 = vpop.permute.xlu1 %557 }
  0x7a   : > { %1946 = vmatpush3.bf16.msra.mxu1 %v558_v11 }
  0x7b   : > { %1947 = vmatprep.subr.bf16.mxu1 %v2324_v13 }
  0x7d   : > { %v795_v24 = vpop.permute.xlu1 %794 }
  0x81   : > { %v797_v27 = vpop.permute.xlu1 %796 }
  0xa0   : > { %v278_v5 = vpop.xlane.xlu0 %277 }
  0xa1   : > { %v280_v6 = vmul.f32 0.03125, %v278_v5  ;;  %v2331_v5 = vmov 0  }
  0xa3   : > { %v281_v7 = vsub.f32 %v272_v0, %v280_v6 }
  0xa5   : > { %v282_v8 = vmul.f32 %v281_v7, %v281_v7 }
  0xa7   : > { %v283_v9 = vsel %vm275_vm0, %v282_v8, 0.0 }
  0xa8   : > { %284 = vadd.xlane.f32.xlu0 %v283_v9 }
  0xbe   : > { %559 = vrot.lane.b32.xlu0 %v2161_v10, %s2322_s10  ;;  %s2575_s10 = smov 0  }
 0x135   : > { %v285_v15 = vpop.xlane.xlu0 %284 }
 0x136   : > { %v286_v16 = vmul.f32 0.03125, %v285_v15 }
 0x138   : > { %v287_v17 = vadd.f32 1e-05, %v286_v16 }
 0x139   : > { %v560_v18 = vpop.permute.xlu0 %559 }
 0x13a   : > { %2166 = vrsqrt.f32 %v287_v17  ;;  %1948 = vmatpush3.bf16.msra.mxu1 %v560_v18 }
 0x144   : > { %v2167_v19 = vpop.eup %2166 }
 0x145   : > { %v289_v21 = vmul.f32 %v2167_v19, %v281_v7 }
 0x147   : > { %v296_v23 = vmul.f32 %v1879_v20, %v289_v21 }
 0x149   : > { %v303_v25 = vadd.f32 %v1880_v22, %v296_v23 }
 0x14b   : > { %v304_v26 = vpack.c.bf16 %v303_v25, %v303_v25 }
 0x14d   : > { %1942 = vmatmul.mubr.msk.bf16.vlgmr.msra.gmra.mrb[0].mxu0 %vm275_vm0, %v304_v26  ;;  %1950 = vmatmul.mubr.msk.bf16.vlgmr.msra.gmra.mrb[0].mxu1 %vm275_vm0, %v304_v26 }
 0x14e   : > { %1954 = vmatpush3.bf16.msra.mxu0 %v795_v24  ;;  %1957 = vmatprep.mubr.msk.bf16.mxu0 %vm2325_vm1, %v2324_v13 }
 0x14f   : > { %1955 = vmatprep.subr.bf16.mxu0 %v2324_v13 }
 0x152   : > { %1956 = vmatpush3.bf16.msra.mxu0 %v797_v27 }
 0x155   : > { %1958 = vmatmul.mubr.msk.bf16.vlgmr.msra.gmra.mrb[4].mxu0 %vm275_vm0, %v304_v26 }
 0x220   : > { %v358_v28 = vpop.f32.mrb[0].mxu0  ;;  %v597_v29 = vpop.f32.mrb[0].mxu1 }
 0x221   : > { %v603_v30 = vpack.c.bf16 %v597_v29, %v597_v29  ;;  %v1943_v31 = vpop.f32.mrb[1].mxu0  ;;  %v1951_v32 = vpop.f32.mrb[1].mxu1  ;;  %v364_v37 = vmul.f32 0.35355338, %v358_v28 }
 0x222   : > { %v361_v33 = vpop.f32.mrb[2].mxu0  ;;  %v600_v34 = vpop.f32.mrb[2].mxu1 }
 0x223   : > { %v1944_v35 = vpop.f32.mrb[3].mxu0  ;;  %609 = vrot.lane.b32.xlu0 %v603_v30, %s2326_s30  ;;  %605 = vrot.lane.b32.xlu1 %v603_v30, %s2327_s8  ;;  %v1952_v36 = vpop.f32.mrb[3].mxu1  ;;  %v2442_v39 = vpack.c.bf16 %v364_v37, %v364_v37  ;;  %v617_v63 = vrot.slane %v603_v30, %v2451_v52 }
 0x227   : > { %607 = vrot.lane.b32.xlu1 %v603_v30, %s2328_s9 }
 0x228   : > { %v834_v38 = vpop.f32.mrb[4].mxu0 }
 0x229   : > { %v840_v40 = vpack.c.bf16 %v834_v38, %v834_v38  ;;  %v1959_v41 = vpop.f32.mrb[5].mxu0  ;;  %v379_v38 = vrot.slane %v2442_v39, %v2451_v52 }
 0x22a   : > { %v837_v42 = vpop.f32.mrb[6].mxu0 }
 0x22b   : > { %v1960_v43 = vpop.f32.mrb[7].mxu0  ;;  %844 = vrot.lane.b32.xlu0 %v840_v40, %s2328_s9  ;;  %367 = vrot.lane.b32.xlu1 %v2442_v39, %s2327_s8  ;;  %v854_v14 = vrot.slane %v840_v40, %v2451_v52 }
 0x22f   : > { %369 = vrot.lane.b32.xlu1 %v2442_v39, %s2328_s9 }
 0x233   : > { %371 = vrot.lane.b32.xlu1 %v2442_v39, %s2326_s30 }
 0x237   : > { %842 = vrot.lane.b32.xlu1 %v840_v40, %s2327_s8 }
 0x23b   : > { %846 = vrot.lane.b32.xlu1 %v840_v40, %s2326_s30 }
 0x295   : > { %v610_v53 = vpop.permute.xlu0 %609  ;;  %v606_v54 = vpop.permute.xlu1 %605 }
 0x296   : > { %v659_v55 = vrot.slane %v610_v53, %v2451_v52  ;;  %v651_v57 = vrot.slane %v606_v54, %v2451_v52 }
 0x298   : > { %v660_v58 = vcombine.low %v651_v57, %v659_v55  ;;  %v661_v59 = vcombine.high %v651_v57, %v659_v55 }
 0x299   : > { %v608_v60 = vpop.permute.xlu1 %607 }
 0x29a   : > { %v668_v61 = vrot.slane %v660_v58, %v2455_v56  ;;  %v625_v62 = vrot.slane %v608_v60, %v2451_v52  ;;  %v675_v0 = vrot.slane %v661_v59, %v2455_v56 }
 0x29c   : > { %v626_v1 = vcombine.low %v617_v63, %v625_v62  ;;  %v627_v2 = vcombine.high %v617_v63, %v625_v62  ;;  %v676_v6 = vcombine.high %v668_v61, %v2331_v5  ;;  %v677_v10 = vcombine.high %v675_v0, %v2331_v5 }
 0x29d   : > { %v845_v3 = vpop.permute.xlu0 %844  ;;  %v368_v4 = vpop.permute.xlu1 %367  ;;  %v683_v11 = vshrl.u32 %v668_v61, 16  ;;  %v699_v12 = vshrl.u32 %v675_v0, 16 }
 0x29e   : > { %v862_v7 = vrot.slane %v845_v3, %v2451_v52  ;;  %v634_v8 = vrot.slane %v626_v1, %v2455_v56  ;;  %v641_v9 = vrot.slane %v627_v2, %v2455_v56  ;;  %v691_v20 = vshrl.u32 %v676_v6, 16 }
 0x29f   : > { %v707_v28 = vshrl.u32 %v677_v10, 16  ;;  %v413_v45 = vrot.slane %v368_v4, %v2451_v52 }
 0x2a0   : > { %v642_v15 = vcombine.high %v634_v8, %v2331_v5  ;;  %v643_v16 = vcombine.high %v641_v9, %v2331_v5  ;;  %v680_v17 = vpack.i.b16 %v668_v61, %v634_v8  ;;  %v682_v18 = vshrl.u32 %v634_v8, 16 }
 0x2a1   : > { %v370_v19 = vpop.permute.xlu1 %369  ;;  %v696_v21 = vpack.i.b16 %v675_v0, %v641_v9  ;;  %v698_v22 = vshrl.u32 %v641_v9, 16  ;;  %v863_v23 = vcombine.low %v854_v14, %v862_v7  ;;  %v864_v34 = vcombine.high %v854_v14, %v862_v7 }
 0x2a2   : > { %v684_v24 = vpack.i.b16 %v683_v11, %v682_v18  ;;  %v688_v25 = vpack.i.b16 %v676_v6, %v642_v15  ;;  %v690_v26 = vshrl.u32 %v642_v15, 16  ;;  %v704_v27 = vpack.i.b16 %v677_v10, %v643_v16 }
 0x2a3   : > { %v700_v29 = vpack.i.b16 %v699_v12, %v698_v22  ;;  %v706_v30 = vshrl.u32 %v643_v16, 16  ;;  %v710_v31 = vcombine.low %v680_v17, %v696_v21  ;;  %v2475_v42 = vrot.slane %v863_v23, %v2455_v56 }
 0x2a4   : > { %v692_v32 = vpack.i.b16 %v691_v20, %v690_v26  ;;  %v718_v33 = vcombine.low %v688_v25, %v704_v27  ;;  %v387_v43 = vrot.slane %v370_v19, %v2451_v52  ;;  %v2481_v49 = vrot.slane %v864_v34, %v2455_v56 }
 0x2a5   : > { %v372_v35 = vpop.permute.xlu1 %371  ;;  %v708_v36 = vpack.i.b16 %v707_v28, %v706_v30  ;;  %v735_v37 = vcombine.low %v684_v24, %v700_v29  ;;  %v717_v40 = vrot.slane %v710_v31, %v2451_v52  ;;  %v2488_v60 = vcombine.high %v2475_v42, %v2331_v5 }
 0x2a6   : > { %v725_v41 = vrot.slane %v718_v33, %v2451_v52  ;;  %v421_v47 = vrot.slane %v372_v35, %v2451_v52  ;;  %v388_v39 = vcombine.low %v379_v38, %v387_v43  ;;  %v389_v51 = vcombine.high %v379_v38, %v387_v43 }
 0x2a7   : > { %v743_v44 = vcombine.low %v692_v32, %v708_v36  ;;  %v742_v54 = vrot.slane %v735_v37, %v2451_v52 }
 0x2a8   : > { %v726_v48 = vcombine.low %v717_v40, %v725_v41  ;;  %v422_v57 = vcombine.low %v413_v45, %v421_v47  ;;  %v423_v58 = vcombine.high %v413_v45, %v421_v47  ;;  %v396_v61 = vrot.slane %v388_v39, %v2455_v56 }
 0x2a9   : > { %v843_v53 = vpop.permute.xlu1 %842  ;;  %v750_v55 = vrot.slane %v743_v44, %v2451_v52  ;;  %v403_v62 = vrot.slane %v389_v51, %v2455_v56  ;;  %v880_v45 = vcombine.high %v2481_v49, %v2331_v5  ;;  %v919_v51 = vshrl.u32 %v2475_v42, 16 }
 0x2aa   : > { %v733_v59 = vrot.slane %v726_v48, %v2455_v56  ;;  %v430_v0 = vrot.slane %v422_v57, %v2455_v56  ;;  %v437_v1 = vrot.slane %v423_v58, %v2455_v56  ;;  %v888_v2 = vrot.slane %v843_v53, %v2451_v52 }
 0x2ab   : > { %v751_v63 = vcombine.low %v742_v54, %v750_v55  ;;  %v404_v6 = vcombine.high %v396_v61, %v2331_v5  ;;  %v405_v7 = vcombine.high %v403_v62, %v2331_v5  ;;  %v444_v9 = vshrl.u32 %v396_v61, 16 }
 0x2ac   : > { %v734_v3 = vcombine.high %v733_v59, %v2331_v5  ;;  %v764_v4 = vshrl.u32 %v733_v59, 16  ;;  %v460_v10 = vshrl.u32 %v403_v62, 16  ;;  %v438_v11 = vcombine.high %v430_v0, %v2331_v5 }
 0x2ad   : > { %v758_v8 = vrot.slane %v751_v63, %v2455_v56  ;;  %v452_v14 = vshrl.u32 %v404_v6, 16  ;;  %v468_v15 = vshrl.u32 %v405_v7, 16  ;;  %v439_v16 = vcombine.high %v437_v1, %v2331_v5  ;;  %v847_v25 = vpop.permute.xlu1 %846 }
 0x2ae   : > { %v772_v12 = vshrl.u32 %v734_v3, 16  ;;  %v442_v20 = vpack.i.b16 %v430_v0, %v396_v61  ;;  %v445_v21 = vshrl.u32 %v430_v0, 16  ;;  %v450_v22 = vpack.i.b16 %v438_v11, %v404_v6 }
 0x2af   : > { %v759_v17 = vcombine.high %v758_v8, %v2331_v5  ;;  %v762_v18 = vpack.i.b16 %v758_v8, %v733_v59  ;;  %v765_v19 = vshrl.u32 %v758_v8, 16  ;;  %v453_v23 = vshrl.u32 %v438_v11, 16 }
 0x2b0   : > { %v458_v24 = vpack.i.b16 %v437_v1, %v403_v62  ;;  %v461_v29 = vshrl.u32 %v437_v1, 16  ;;  %v446_v30 = vpack.i.b16 %v445_v21, %v444_v9  ;;  %v466_v32 = vpack.i.b16 %v439_v16, %v405_v7 }
 0x2b1   : > { %v766_v26 = vpack.i.b16 %v765_v19, %v764_v4  ;;  %v770_v27 = vpack.i.b16 %v759_v17, %v734_v3  ;;  %v773_v28 = vshrl.u32 %v759_v17, 16  ;;  %776 = vst.msk [vmem:[#allocation3] sm:$0xf] %vm538_vm2, %v762_v18  ;;  %v454_v31 = vpack.i.b16 %v453_v23, %v452_v14 }
 0x2b2   : > { %v469_v33 = vshrl.u32 %v439_v16, 16  ;;  %v462_v35 = vpack.i.b16 %v461_v29, %v460_v10  ;;  %v472_v36 = vcombine.low %v442_v20, %v458_v24  ;;  %v896_v37 = vrot.slane %v847_v25, %v2451_v52 }
 0x2b3   : > { %v774_v34 = vpack.i.b16 %v773_v28, %v772_v12  ;;  %777 = vst.msk [vmem:[#allocation3 + $0x4] sm:$0xf] %vm538_vm2, %v766_v26  ;;  %778 = vst.msk [vmem:[#allocation3 + $0x8] sm:$0xf] %vm538_vm2, %v770_v27  ;;  %v480_v40 = vcombine.low %v450_v22, %v466_v32  ;;  %v927_v53 = vshrl.u32 %v2488_v60, 16  ;;  %v935_v57 = vshrl.u32 %v2481_v49, 16 }
 0x2b4   : > { %v470_v38 = vpack.i.b16 %v469_v33, %v468_v15  ;;  %v497_v41 = vcombine.low %v446_v30, %v462_v35  ;;  %v897_v43 = vcombine.low %v888_v2, %v896_v37  ;;  %v898_v44 = vcombine.high %v888_v2, %v896_v37 }
 0x2b5   : > { %779 = vst.msk [vmem:[#allocation3 + $0xc] sm:$0xf] %vm538_vm2, %v774_v34  ;;  %v479_v47 = vrot.slane %v472_v36, %v2451_v52  ;;  %v487_v48 = vrot.slane %v480_v40, %v2451_v52  ;;  %v943_v11 = vshrl.u32 %v880_v45, 16 }
 0x2b6   : > { %v505_v39 = vcombine.low %v454_v31, %v470_v38  ;;  %v905_v54 = vrot.slane %v897_v43, %v2455_v56  ;;  %v912_v55 = vrot.slane %v898_v44, %v2455_v56  ;;  %v504_v59 = vrot.slane %v497_v41, %v2451_v52 }
 0x2b7   : > { %v488_v58 = vcombine.low %v479_v47, %v487_v48 }
 0x2b8   : > { %v512_v61 = vrot.slane %v505_v39, %v2451_v52  ;;  %v913_v62 = vcombine.high %v905_v54, %v2331_v5  ;;  %v914_v63 = vcombine.high %v912_v55, %v2331_v5  ;;  %v917_v0 = vpack.i.b16 %v905_v54, %v2475_v42 }
 0x2b9   : > { %v920_v1 = vshrl.u32 %v905_v54, 16  ;;  %v495_v2 = vrot.slane %v488_v58, %v2455_v56  ;;  %v933_v4 = vpack.i.b16 %v912_v55, %v2481_v49  ;;  %v936_v6 = vshrl.u32 %v912_v55, 16 }
 0x2ba   : > { %v513_v3 = vcombine.low %v504_v59, %v512_v61  ;;  %v925_v8 = vpack.i.b16 %v913_v62, %v2488_v60  ;;  %v928_v9 = vshrl.u32 %v913_v62, 16  ;;  %v941_v10 = vpack.i.b16 %v914_v63, %v880_v45 }
 0x2bb   : > { %v921_v7 = vpack.i.b16 %v920_v1, %v919_v51  ;;  %v496_v12 = vcombine.high %v495_v2, %v2331_v5  ;;  %v937_v15 = vpack.i.b16 %v936_v6, %v935_v57  ;;  %v944_v42 = vshrl.u32 %v914_v63, 16 }
 0x2bc   : > { %v520_v14 = vrot.slane %v513_v3, %v2455_v56  ;;  %v929_v16 = vpack.i.b16 %v928_v9, %v927_v53  ;;  %v947_v17 = vcombine.low %v917_v0, %v933_v4  ;;  %v955_v18 = vcombine.low %v925_v8, %v941_v10 }
 0x2bd   : > { %v526_v49 = vshrl.u32 %v495_v2, 16  ;;  %v945_v22 = vpack.i.b16 %v944_v42, %v943_v11  ;;  %v972_v24 = vcombine.low %v921_v7, %v937_v15  ;;  %v534_v27 = vshrl.u32 %v496_v12, 16 }
 0x2be   : > { %v521_v19 = vcombine.high %v520_v14, %v2331_v5  ;;  %v524_v20 = vpack.i.b16 %v520_v14, %v495_v2  ;;  %v527_v21 = vshrl.u32 %v520_v14, 16  ;;  %v954_v60 = vrot.slane %v947_v17, %v2451_v52 }
 0x2bf   : > { %v962_v23 = vrot.slane %v955_v18, %v2451_v52  ;;  %v980_v30 = vcombine.low %v929_v16, %v945_v22  ;;  %v979_v33 = vrot.slane %v972_v24, %v2451_v52  ;;  %v2551_v57 = vmov 0.0  }
 0x2c0   : > { %v528_v25 = vpack.i.b16 %v527_v21, %v526_v49  ;;  %v532_v26 = vpack.i.b16 %v521_v19, %v496_v12  ;;  %v535_v28 = vshrl.u32 %v521_v19, 16  ;;  %539 = vst.msk [vmem:[#allocation2] sm:$0xf] %vm538_vm2, %v524_v20  ;;  %v2555_v58 = vmov 0.0  }
 0x2c1   : > { %v963_v29 = vcombine.low %v954_v60, %v962_v23  ;;  %v987_v34 = vrot.slane %v980_v30, %v2451_v52  ;;  %v2557_v59 = vmov 0.0   ;;  %v2559_v61 = vmov 0.0  }
 0x2c2   : > { %v536_v31 = vpack.i.b16 %v535_v28, %v534_v27  ;;  %540 = vst.msk [vmem:[#allocation2 + $0x4] sm:$0xf] %vm538_vm2, %v528_v25  ;;  %541 = vst.msk [vmem:[#allocation2 + $0x8] sm:$0xf] %vm538_vm2, %v532_v26  ;;  %v2561_v62 = vmov 0.0   ;;  %v2563_v63 = vmov 0.0  }
 0x2c3   : > { %v970_v32 = vrot.slane %v963_v29, %v2455_v56  ;;  %v988_v35 = vcombine.low %v979_v33, %v987_v34  ;;  %v2565_v0 = vmov 0.0   ;;  %v2567_v1 = vmov -1e+30  }
 0x2c4   : > { %542 = vst.msk [vmem:[#allocation2 + $0xc] sm:$0xf] %vm538_vm2, %v536_v31  ;;  %v2569_v2 = vmov -1e+30   ;;  %v2571_v3 = vmov -1e+30  }
 0x2c5   : > { %v971_v37 = vcombine.high %v970_v32, %v2331_v5  ;;  %v995_v38 = vrot.slane %v988_v35, %v2455_v56  ;;  %v1001_v45 = vshrl.u32 %v970_v32, 16  ;;  %v2573_v4 = vmov -1e+30  }
 0x2c7   : > { %v2536_v36 = vld [vmem:[#allocation2] sm:$0xf]  ;;  %v996_v43 = vcombine.high %v995_v38, %v2331_v5  ;;  %v999_v44 = vpack.i.b16 %v995_v38, %v970_v32  ;;  %v1002_v47 = vshrl.u32 %v995_v38, 16  ;;  %v1009_v53 = vshrl.u32 %v971_v37, 16 }
 0x2c8   : > { %v2553_v5 = vmov 0.0  }
 0x2c9   : > { %v2540_v40 = vld [vmem:[#allocation2 + $0x4] sm:$0xf]  ;;  %v2542_v41 = vld [vmem:[#allocation2 + $0x8] sm:$0xf]  ;;  %v1003_v39 = vpack.i.b16 %v1002_v47, %v1001_v45  ;;  %v1007_v51 = vpack.i.b16 %v996_v43, %v971_v37  ;;  %v1010_v54 = vshrl.u32 %v996_v43, 16 }
 0x2ca   : > { %1013 = vst.msk [vmem:[#allocation4] sm:$0xf] %vm538_vm2, %v999_v44 }
 0x2cb   : > { %v2545_v48 = vld [vmem:[#allocation2 + $0xc] sm:$0xf]  ;;  %v1011_v55 = vpack.i.b16 %v1010_v54, %v1009_v53  ;;  %1014 = vst.msk [vmem:[#allocation4 + $0x4] sm:$0xf] %vm538_vm2, %v1003_v39  ;;  %1015 = vst.msk [vmem:[#allocation4 + $0x8] sm:$0xf] %vm538_vm2, %v1007_v51 }
 0x2cd   : > { %1016 = vst.msk [vmem:[#allocation4 + $0xc] sm:$0xf] %vm538_vm2, %v1011_v55 }
 0x2ce LB: >> { %v2332_v6 = vmov 0.0   ;;  %s1890_s11 = sshll.u32 %s2320_s10, 3  ;;  %vm2333_vm3 = vmmov 0   ;;  %vm1060_vm4 = vcmask 64512   ;;  %v1250_v16 = vand.u32 127, %v376_v46  ;;  %s1030_s10 = sadd.s32 1, %s2320_s10   ;;  %s2320_s10 = sphi %s2575_s10, %s1030_s10   ;;  %v2316_v4 = vphi %v2573_v4, %v2817_v4   ;;  %v2312_v3 = vphi %v2571_v3, %v2816_v3   ;;  %v2308_v2 = vphi %v2569_v2, %v2815_v2   ;;  %v2304_v1 = vphi %v2567_v1, %v2814_v1   ;;  %v2300_v0 = vphi %v2565_v0, %v2813_v0   ;;  %v2296_v63 = vphi %v2563_v63, %v2812_v63   ;;  %v2292_v62 = vphi %v2561_v62, %v2811_v62   ;;  %v2288_v61 = vphi %v2559_v61, %v2810_v61   ;;  %v2284_v59 = vphi %v2557_v59, %v2809_v59   ;;  %v2280_v58 = vphi %v2555_v58, %v2808_v58   ;;  %v2276_v5 = vphi %v2553_v5, %v2807_v5   ;;  %v2272_v57 = vphi %v2551_v57, %v2806_v57  }
 0x2cf   : >> { %1961 = vmatprep.subr.bf16.mxu0 %v2332_v6  ;;  %1967 = vmatprep.subr.bf16.mxu1 %v2332_v6  ;;  %s2625_s12 = sshra.s32 %s1890_s11, 3  ;;  %v1251_v42 = vstv %s1890_s11  ;;  %vm1331_vm6 = vcmask 1043456   ;;  %p2719_p5 = scmp.ge.s32.totalorder %s1030_s10, 1 }
 0x2d0   : >> { %1963 = vmatprep.mubr.msk.bf16.mxu0 %vm2333_vm3, %v2332_v6  ;;  %1969 = vmatprep.mubr.msk.bf16.mxu1 %vm2333_vm3, %v2332_v6  ;;  %s1891_s13 = sshll.u32 %s2625_s12, 2  ;;  %v1252_v17 = vadd.s32 %v1251_v42, %v1250_v16  ;;  %s2334_s21 = smov (%p2719_p5), 8   ;;  %vm1675_vm7 = vcmask (%p2719_p5), 130048   ;;  %vm1677_vm8 = vcmask (%p2719_p5), 195584  }
 0x2d1   : >> { %s1049_s14 = scalar_lea.vmem [#allocation3], %s1891_s13  ;;  %s1055_s15 = scalar_lea.vmem [#allocation4], %s1891_s13 }
 0x2d2   : >> { %v1050_v7 = vld [vmem:[%s1049_s14] sm:$0xf]  ;;  %v1051_v8 = vld [vmem:[%s1049_s14 + $0x4] sm:$0xf]  ;;  %v1052_v11 = vld [vmem:[%s1049_s14 + $0x8] sm:$0xf]  ;;  %vm1253_vm5 = vcmp.gt.s32.totalorder %v1252_v17, %v2448_v50 }
 0x2d3   : >> { %v1065_v9 = vsel %vm1060_vm4, %v1050_v7, 0  ;;  %v1111_v10 = vsel %vm1060_vm4, %v1051_v8, 0  ;;  %v1053_v12 = vld [vmem:[%s1049_s14 + $0xc] sm:$0xf]  ;;  %v1157_v14 = vsel %vm1060_vm4, %v1052_v11, 0  ;;  %s2335_s25 = smov (%p2719_p5), 24  }
 0x2d4   : >> { %1962 = vmatpush3.bf16.xpose.msra.mxu0 %v1065_v9  ;;  %1968 = vmatpush3.bf16.xpose.msra.mxu1 %v1111_v10  ;;  %v1203_v15 = vsel %vm1060_vm4, %v1053_v12, 0  ;;  %v1056_v45 = vld [vmem:[%s1055_s15] sm:$0xf]  ;;  %v1057_v39 = vld [vmem:[%s1055_s15 + $0x4] sm:$0xf]  ;;  %s2336_s26 = smov (%p2719_p5), 16  }
 0x2d5   : >> { %1973 = vmatprep.subr.bf16.mxu0 %v2332_v6  ;;  %1979 = vmatprep.subr.bf16.mxu1 %v2332_v6  ;;  %v1333_v47 = vsel %vm1331_vm6, %v1056_v45, 0  ;;  %v1379_v51 = vsel %vm1331_vm6, %v1057_v39, 0  ;;  %v1058_v53 = vld [vmem:[%s1055_s15 + $0x8] sm:$0xf]  ;;  %v1059_v55 = vld [vmem:[%s1055_s15 + $0xc] sm:$0xf] }
 0x2d6   : >> { %v1425_v54 = vsel %vm1331_vm6, %v1058_v53, 0  ;;  %v1471_v7 = vsel %vm1331_vm6, %v1059_v55, 0 }
 0x2db   : >> { %1964 = vmatmul.mubr.msk.bf16.vlgmr.msra.gmra.mrb[0].mxu0 %vm1060_vm4, %v2536_v36  ;;  %1970 = vmatmul.mubr.msk.bf16.vlgmr.msra.gmra.mrb[0].mxu1 %vm1060_vm4, %v2540_v40 }
 0x2dc   : >> { %1974 = vmatpush3.bf16.xpose.msra.mxu0 %v1157_v14  ;;  %1980 = vmatpush3.bf16.xpose.msra.mxu1 %v1203_v15 }
 0x2dd   : >> { %1975 = vmatprep.mubr.msk.bf16.mxu0 %vm2333_vm3, %v2332_v6  ;;  %1981 = vmatprep.mubr.msk.bf16.mxu1 %vm2333_vm3, %v2332_v6 }
 0x2de   : >> { %1985 = vmatprep.subr.bf16.mxu0 %v2332_v6  ;;  %1991 = vmatprep.subr.bf16.mxu1 %v2332_v6 }
 0x2e3   : >> { %1976 = vmatmul.mubr.msk.bf16.vlgmr.msra.gmra.mrb[4].mxu0 %vm1060_vm4, %v2542_v41  ;;  %1982 = vmatmul.mubr.msk.bf16.vlgmr.msra.gmra.mrb[4].mxu1 %vm1060_vm4, %v2545_v48 }
 0x2e4   : >> { %1987 = vmatprep.mubr.msk.bf16.mxu0 %vm2333_vm3, %v2332_v6  ;;  %1993 = vmatprep.mubr.msk.bf16.mxu1 %vm2333_vm3, %v2332_v6 }
 0x2e5   : >> { %1986 = vmatpush3.bf16.msra.mxu0 %v1333_v47  ;;  %1992 = vmatpush3.bf16.msra.mxu1 %v1379_v51 }
 0x2e6   : >> { %1997 = vmatprep.subr.bf16.mxu0 %v2332_v6  ;;  %2003 = vmatprep.subr.bf16.mxu1 %v2332_v6 }
 0x3ae   : >> { %v1101_v18 = vpop.f32.mrb[0].mxu0  ;;  %v1147_v19 = vpop.f32.mrb[0].mxu1 }
 0x3af   : >> { %v1256_v20 = vsel %vm1253_vm5, -1e+30, %v1101_v18  ;;  %v1965_v49 = vpop.f32.mrb[1].mxu0  ;;  %v1257_v21 = vsel %vm1253_vm5, -1e+30, %v1147_v19  ;;  %v1971_v22 = vpop.f32.mrb[1].mxu1 }
 0x3b0   : >> { %v1104_v60 = vpop.f32.mrb[2].mxu0  ;;  %v1260_v23 = vsel %vm1060_vm4, %v1256_v20, -inf  ;;  %v1150_v24 = vpop.f32.mrb[2].mxu1  ;;  %v1263_v27 = vsel %vm1060_vm4, %v1257_v21, -inf }
 0x3b1   : >> { %1261 = vmax.xlane.f32.xlu0 %v1260_v23  ;;  %v1966_v25 = vpop.f32.mrb[3].mxu0  ;;  %v1972_v26 = vpop.f32.mrb[3].mxu1 }
 0x3b5   : >> { %1264 = vmax.xlane.f32.xlu0 %v1263_v27 }
 0x3b6   : >> { %v1193_v28 = vpop.f32.mrb[4].mxu0  ;;  %v1239_v29 = vpop.f32.mrb[4].mxu1 }
 0x3b7   : >> { %v1258_v30 = vsel %vm1253_vm5, -1e+30, %v1193_v28  ;;  %v1977_v31 = vpop.f32.mrb[5].mxu0  ;;  %v1259_v32 = vsel %vm1253_vm5, -1e+30, %v1239_v29  ;;  %v1983_v33 = vpop.f32.mrb[5].mxu1 }
 0x3b8   : >> { %v1196_v34 = vpop.f32.mrb[6].mxu0  ;;  %v1266_v35 = vsel %vm1060_vm4, %v1258_v30, -inf  ;;  %v1242_v37 = vpop.f32.mrb[6].mxu1  ;;  %v1269_v44 = vsel %vm1060_vm4, %v1259_v32, -inf }
 0x3b9   : >> { %1267 = vmax.xlane.f32.xlu1 %v1266_v35  ;;  %v1978_v38 = vpop.f32.mrb[7].mxu0  ;;  %v1984_v43 = vpop.f32.mrb[7].mxu1 }
 0x3bd   : >> { %1270 = vmax.xlane.f32.xlu1 %v1269_v44 }
 0x43e   : >> { %v1262_v8 = vpop.xlane.xlu0 %1261 }
 0x43f   : >> { %v2675_v9 = vmax.f32 %v2316_v4, %v1262_v8  }
 0x441   : >> { %v1276_v10 = vsub.f32 %v2316_v4, %v2675_v9  ;;  %v1288_v11 = vsub.f32 %v1256_v20, %v2675_v9 }
 0x442   : >> { %v1265_v12 = vpop.xlane.xlu0 %1264 }
 0x443   : >> { %v1292_v14 = vmul.f32 1.442695, %v1288_v11  ;;  %v2681_v15 = vmax.f32 %v2312_v3, %v1265_v12   ;;  %v1280_v34 = vmul.f32 1.442695, %v1276_v10 }
 0x445   : >> { %v1277_v16 = vsub.f32 %v2312_v3, %v2681_v15  ;;  %v1289_v42 = vsub.f32 %v1257_v21, %v2681_v15  ;;  %2168 = vpow2.f32 %v1292_v14 }
 0x446   : >> { %v1268_v17 = vpop.xlane.xlu1 %1267 }
 0x447   : >> { %v1294_v18 = vmul.f32 1.442695, %v1289_v42  ;;  %v2687_v19 = vmax.f32 %v2308_v2, %v1268_v17   ;;  %v1282_v35 = vmul.f32 1.442695, %v1277_v16 }
 0x449   : >> { %v1278_v4 = vsub.f32 %v2308_v2, %v2687_v19  ;;  %v1290_v20 = vsub.f32 %v1258_v30, %v2687_v19  ;;  %2170 = vpow2.f32 %v1294_v18 }
 0x44a   : >> { %v1271_v49 = vpop.xlane.xlu1 %1270 }
 0x44b   : >> { %v1296_v22 = vmul.f32 1.442695, %v1290_v20  ;;  %v2693_v60 = vmax.f32 %v2304_v1, %v1271_v49   ;;  %v1284_v37 = vmul.f32 1.442695, %v1278_v4 }
 0x44d   : >> { %v1279_v3 = vsub.f32 %v2304_v1, %v2693_v60  ;;  %v1291_v21 = vsub.f32 %v1259_v32, %v2693_v60  ;;  %2172 = vpow2.f32 %v1296_v22 }
 0x44f   : >> { %v1298_v23 = vmul.f32 1.442695, %v1291_v21  ;;  %v2169_v24 = vpop.eup %2168 }
 0x450   : >> { %v1304_v25 = vsel %vm1060_vm4, %v2169_v24, 0.0  ;;  %v1324_v26 = vpack.c.bf16 %v2169_v24, %v2169_v24 }
 0x451   : >> { %2174 = vpow2.f32 %v1298_v23  ;;  %1305 = vadd.xlane.f32.xlu0 %v1304_v25 }
 0x452   : >> { %1988 = vmatmul.mubr.msk.bf16.vlgmr.msra.gmra.mrb[8].mxu0 %vm1060_vm4, %v1324_v26  ;;  %2176 = vpow2.f32 %v1280_v34 }
 0x453   : >> { %v2171_v2 = vpop.eup %2170  ;;  %1998 = vmatpush3.bf16.msra.mxu0 %v1425_v54  ;;  %1999 = vmatprep.mubr.msk.bf16.mxu0 %vm2333_vm3, %v2332_v6  ;;  %2178 = vpow2.f32 %v1282_v35 }
 0x454   : >> { %v1307_v27 = vsel %vm1060_vm4, %v2171_v2, 0.0  ;;  %v1325_v1 = vpack.c.bf16 %v2171_v2, %v2171_v2  ;;  %2180 = vpow2.f32 %v1284_v37  ;;  %2009 = vmatprep.subr.bf16.mxu0 (%p2719_p5), %v2324_v13 }
 0x455   : >> { %1308 = vadd.xlane.f32.xlu1 %v1307_v27 }
 0x456   : >> { %1994 = vmatmul.mubr.msk.bf16.vlgmr.msra.gmra.mrb[8].mxu1 %vm1060_vm4, %v1325_v1 }
 0x457   : >> { %v2173_v28 = vpop.eup %2172  ;;  %2004 = vmatpush3.bf16.msra.mxu1 %v1471_v7  ;;  %2005 = vmatprep.mubr.msk.bf16.mxu1 %vm2333_vm3, %v2332_v6  ;;  %v1286_v6 = vmul.f32 1.442695, %v1279_v3 }
 0x458   : >> { %v1310_v29 = vsel %vm1060_vm4, %v2173_v28, 0.0  ;;  %v1326_v30 = vpack.c.bf16 %v2173_v28, %v2173_v28 }
 0x459   : >> { %1311 = vadd.xlane.f32.xlu0 %v1310_v29  ;;  %2182 = vpow2.f32 %v1286_v6  ;;  %v2184_v6 = vld [vmem:[%s2802_s4] sm:$0xff] (%p2719_p5)  }
 0x45a   : >> { %2000 = vmatmul.mubr.msk.bf16.vlgmr.msra.gmra.mrb[12].mxu0 %vm1060_vm4, %v1326_v30 }
 0x45b   : >> { %v2175_v31 = vpop.eup %2174  ;;  %2013 = vmatprep.mubr.msk.bf16.mxu0 (%p2719_p5), %vm2325_vm1, %v2324_v13  ;;  %2010 = vmatpush3.bf16.msra.mxu0 (%p2719_p5), %v2184_v6 }
 0x45c   : >> { %v1313_v32 = vsel %vm1060_vm4, %v2175_v31, 0.0  ;;  %v1327_v33 = vpack.c.bf16 %v2175_v31, %v2175_v31  ;;  %v2177_v38 = vpop.eup %2176  ;;  %2011 = vmatprep.subr.bf16.mxu0 (%p2719_p5), %v2324_v13 }
 0x45d   : >> { %1314 = vadd.xlane.f32.xlu1 %v1313_v32  ;;  %v1300_v43 = vmul.f32 %v2300_v0, %v2177_v38  ;;  %v2179_v44 = vpop.eup %2178  ;;  %v1320_v16 = vmul.f32 %v2284_v59, %v2177_v38 }
 0x45e   : >> { %2006 = vmatmul.mubr.msk.bf16.vlgmr.msra.gmra.mrb[12].mxu1 %vm1060_vm4, %v1327_v33  ;;  %v1301_v39 = vmul.f32 %v2296_v63, %v2179_v44  ;;  %v2181_v51 = vpop.eup %2180  ;;  %v1321_v63 = vmul.f32 %v2280_v58, %v2179_v44 }
 0x45f   : >> { %v1302_v55 = vmul.f32 %v2292_v62, %v2181_v51  ;;  %v1322_v21 = vmul.f32 %v2276_v5, %v2181_v51 }
 0x463   : >> { %v2183_v7 = vpop.eup %2182 }
 0x464   : >> { %v1303_v11 = vmul.f32 %v2288_v61, %v2183_v7  ;;  %v1323_v59 = vmul.f32 %v2272_v57, %v2183_v7 }
 0x4de   : >> { %v1306_v45 = vpop.xlane.xlu0 %1305 }
 0x4df   : >> { %v1316_v47 = vadd.f32 %v1306_v45, %v1300_v43  }
 0x4e1   : > { %2186 = vrcp.f32 (%p2719_p5), %v1316_v47 }
 0x4e2   : >> { %v1309_v53 = vpop.xlane.xlu1 %1308 }
 0x4e3   : >> { %v1317_v54 = vadd.f32 %v1309_v53, %v1301_v39  }
 0x4e5   : > { %2188 = vrcp.f32 (%p2719_p5), %v1317_v54 }
 0x4e6   : >> { %v1312_v8 = vpop.xlane.xlu0 %1311 }
 0x4e7   : >> { %v1318_v10 = vadd.f32 %v1312_v8, %v1302_v55  }
 0x4e9   : > { %2190 = vrcp.f32 (%p2719_p5), %v1318_v10 }
 0x4ea   : >> { %v1315_v12 = vpop.xlane.xlu1 %1314 }
 0x4eb   : >> { %v1319_v14 = vadd.f32 %v1315_v12, %v1303_v11  }
 0x4ed   : > { %2192 = vrcp.f32 (%p2719_p5), %v1319_v14 }
 0x525   : >> { %v1369_v0 = vpop.f32.mrb[8].mxu0 }
 0x526   : >> { %v1513_v42 = vadd.f32 %v1369_v0, %v1320_v16   ;;  %v1989_v17 = vpop.f32.mrb[9].mxu0  ;;  %v2813_v0 = vmov %v1316_v47 }
 0x527   : >> { %v1372_v18 = vpop.f32.mrb[10].mxu0 }
 0x528   : >> { %v1990_v4 = vpop.f32.mrb[11].mxu0 }
 0x529   : >> { %v1415_v20 = vpop.f32.mrb[8].mxu1  ;;  %v2817_v4 = vmov %v2675_v9 }
 0x52a   : >> { %v1514_v49 = vadd.f32 %v1415_v20, %v1321_v63   ;;  %v1995_v22 = vpop.f32.mrb[9].mxu1  ;;  %v2812_v63 = vmov %v1317_v54  ;;  %v2185_v54 = vld [vmem:[%s2802_s4 + $0x8] sm:$0xff] (%p2719_p5)  }
 0x52b   : >> { %v1418_v62 = vpop.f32.mrb[10].mxu1  ;;  %2012 = vmatpush3.bf16.msra.mxu0 (%p2719_p5), %v2185_v54 }
 0x52c   : >> { %v1996_v3 = vpop.f32.mrb[11].mxu1  ;;  %v2808_v58 = vmov %v1514_v49  ;;  %v2811_v62 = vmov %v1318_v10 }
 0x52d   : >> { %v1461_v23 = vpop.f32.mrb[12].mxu0  ;;  %v2816_v3 = vmov %v2681_v15 }
 0x52e   : >> { %v1515_v24 = vadd.f32 %v1461_v23, %v1322_v21   ;;  %v2001_v61 = vpop.f32.mrb[13].mxu0  ;;  %1032 = sbr.rel (!%p2719_p5) target bundleno = 718 (0x2ce), region = 89  ;;  %v1741_v23 = vld [vmem:[%s2393_s28] sm:$0xff] (%p2719_p5) }
 0x52f   : >> { %v1464_v25 = vpop.f32.mrb[14].mxu0  ;;  %v2810_v61 = vmov %v1319_v14 }
 0x530   : >> { %v2002_v26 = vpop.f32.mrb[15].mxu0  ;;  %v2807_v5 = vmov %v1515_v24 }
 0x531   : >> { %v1507_v2 = vpop.f32.mrb[12].mxu1 }
 0x532   : >> { %v1516_v27 = vadd.f32 %v1507_v2, %v1323_v59   ;;  %v2007_v1 = vpop.f32.mrb[13].mxu1  ;;  %v2809_v59 = vmov %v1513_v42  ;;  %v2815_v2 = vmov %v2687_v19  ;;  %v2187_v19 = vpop.eup (%p2719_p5), %2186 }
 0x533   : >> { %v1510_v28 = vpop.f32.mrb[14].mxu1  ;;  %v2814_v1 = vmov %v2693_v60  ;;  %v2189_v60 = vpop.eup (%p2719_p5), %2188  ;;  %v1521_v30 = vmul.f32 (%p2719_p5), %v2187_v19, %v1513_v42 }
 0x534   : >> { %v2008_v29 = vpop.f32.mrb[15].mxu1  ;;  %v2806_v57 = vmov %v1516_v27  ;;  %v2191_v15 = vpop.eup (%p2719_p5), %2190  ;;  %v1522_v31 = vmul.f32 (%p2719_p5), %v2189_v60, %v1514_v49 }
 0x535   : > { %v2193_v32 = vpop.eup %2192  ;;  %v1523_v9 = vmul.f32 %v2191_v15, %v1515_v24  ;;  %v1906_v24 = vld [vmem:[%s2803_s5] ss:$0 sm:$0xff] }
 0x536   : > { %v1524_v33 = vmul.f32 %v2193_v32, %v1516_v27  ;;  %v1749_v61 = vadd.f32 %v1906_v24, %v1741_v23 }
 0x537   : > { %v1525_v34 = vcombine.low %v1521_v30, %v1523_v9  ;;  %v1526_v35 = vcombine.high %v1521_v30, %v1523_v9 }
 0x538   : > { %v1541_v37 = vcombine.low %v1522_v31, %v1524_v33  ;;  %v1542_v46 = vcombine.high %v1522_v31, %v1524_v33 }
 0x539   : > { %v1533_v50 = vrot.slane %v1525_v34, %v2451_v52  ;;  %v1540_v36 = vrot.slane %v1526_v35, %v2451_v52 }
 0x53a   : > { %v1549_v40 = vrot.slane %v1541_v37, %v2451_v52  ;;  %v1556_v41 = vrot.slane %v1542_v46, %v2451_v52 }
 0x53c   : > { %v1557_v48 = vcombine.low %v1533_v50, %v1549_v40  ;;  %v1558_v57 = vcombine.high %v1533_v50, %v1549_v40  ;;  %v1573_v5 = vcombine.low %v1540_v36, %v1556_v41  ;;  %v1574_v58 = vcombine.high %v1540_v36, %v1556_v41 }
 0x53e   : > { %v1565_v38 = vrot.slane %v1557_v48, %v2455_v56  ;;  %v1572_v43 = vrot.slane %v1558_v57, %v2455_v56  ;;  %v1581_v44 = vrot.slane %v1573_v5, %v2455_v56  ;;  %v1588_v45 = vrot.slane %v1574_v58, %v2455_v56 }
 0x540   : > { %v1593_v47 = vcombine.low %v1565_v38, %v1572_v43  ;;  %v1901_v39 = vcombine.high %v1565_v38, %v1572_v43  ;;  %v1609_v51 = vcombine.low %v1581_v44, %v1588_v45  ;;  %v1902_v53 = vcombine.high %v1581_v44, %v1588_v45 }
 0x542   : > { %v1600_v55 = vrot.slane %v1593_v47, %v2451_v52  ;;  %v1608_v7 = vrot.slane %v1901_v39, %v2451_v52  ;;  %v1616_v8 = vrot.slane %v1609_v51, %v2451_v52  ;;  %v1624_v10 = vrot.slane %v1902_v53, %v2451_v52 }
 0x544   : > { %v1625_v11 = vcombine.low %v1600_v55, %v1608_v7  ;;  %v1641_v12 = vcombine.low %v1616_v8, %v1624_v10  ;;  %v1626_v13 = vcombine.high %v1600_v55, %v1608_v7  ;;  %v1642_v14 = vcombine.high %v1616_v8, %v1624_v10 }
 0x546   : > { %v1633_v16 = vrot.slane %v1625_v11, %v2455_v56  ;;  %v1649_v0 = vrot.slane %v1641_v12, %v2455_v56  ;;  %v1640_v42 = vrot.slane %v1626_v13, %v2455_v56  ;;  %v1656_v17 = vrot.slane %v1642_v14, %v2455_v56 }
 0x548   : > { %v1658_v18 = vcombine.high %v1633_v16, %v1649_v0  ;;  %v1660_v4 = vcombine.high %v1640_v42, %v1656_v17  ;;  %v1657_v63 = vcombine.low %v1633_v16, %v1649_v0  ;;  %v1659_v52 = vcombine.low %v1640_v42, %v1656_v17 }
 0x54a   : > { %1662 = vrot.lane.b32.xlu0 %v1658_v18, %s2334_s21  ;;  %1670 = vrot.lane.b32.xlu1 %v1660_v4, %s2335_s25 }
 0x54e   : > { %1666 = vrot.lane.b32.xlu0 %v1659_v52, %s2336_s26 }
 0x5bc   : > { %v1663_v20 = vpop.permute.xlu0 %1662  ;;  %v1671_v49 = vpop.permute.xlu1 %1670 }
 0x5bd   : > { %v1674_v22 = vsel %vm1060_vm4, %v1657_v63, %v1663_v20 }
 0x5c0   : > { %v1667_v62 = vpop.permute.xlu0 %1666 }
 0x5c1   : > { %v1676_v56 = vsel %vm1675_vm7, %v1674_v22, %v1667_v62 }
 0x5c2   : > { %v1678_v3 = vsel %vm1677_vm8, %v1676_v56, %v1671_v49 }
 0x5c3   : > { %v1679_v21 = vpack.c.bf16 %v1678_v3, %v1678_v3 }
 0x5c5   : > { %2014 = vmatmul.mubr.msk.bf16.vlgmr.msra.gmra.mrb[0].mxu0 %vm275_vm0, %v1679_v21 }
 0x698   : > { %v1734_v25 = vpop.f32.mrb[0].mxu0 }
 0x699   : > { %v1750_v26 = vadd.f32 %v1749_v61, %v1734_v25  ;;  %v2015_v59 = vpop.f32.mrb[1].mxu0 }
 0x69a   : > { %v1737_v2 = vpop.f32.mrb[2].mxu0 }
 0x69b   : > { %1751 = vst.msk [vmem:[%s2398_s7] sm:$0xff] %vm275_vm0, %v1750_v26  ;;  %v2016_v27 = vpop.f32.mrb[3].mxu0 }
 0x69c PF: > { %s16_s23 = sadd.s32 1, %s2268_s23   ;;  %s2818_s21 = smov %s2264_s22 }
 0x69d   : > { %p13_p6 = scmp.ge.s32.totalorder %s16_s23, 4   ;;  %s2819_s22 = smov %s2821_s24 }
 0x69f   :  { %15 = sbr.rel (!%p13_p6) target bundleno = 2 (0x2), region = 100 }

</bundles_post_ra>
